<compile_context>
chip_gen: v7x
topology: tpu7x:2x2x1
jax: 0.10.0
libtpu: 0.0.40
codegen_flags: <defaults>
</compile_context>

<pallas_src>
import jax
import jax.numpy as jnp
import numpy as np
from jax.experimental import pallas as pl
from jax.experimental.pallas import tpu as pltpu

LEAKY_SLOPE = 0.01
BN_EPS = 1e-5


def _leaky(h):
    return jnp.where(h > 0, h, LEAKY_SLOPE * h)


# ----------------------------------------------------------------------------
# Single fused kernel: no grid, layer loop statically unrolled, classifier
# epilogue at the end of the same basic block.
# ----------------------------------------------------------------------------
def fused_kernel(x_ref, src_ref, dstt_ref, e_all_ref,
                 w1_ref, w2_ref, b_ref,
                 w1c_ref, w2c_ref, w3r_ref, cb_ref,
                 out_ref):
    f32 = jnp.float32
    bf16 = jnp.bfloat16
    n_layers = w1_ref.shape[0]

    h = x_ref[...]                                       # [N, C] f32 (padded)

    for l in range(n_layers):                            # static unroll
        lay_b = b_ref[l]                                 # [4, C] f32
        b1 = lay_b[1:2]                                  # folded BN (inner)
        b2 = lay_b[2:3]                                  # folded BN (outer)
        one_plus_eps = lay_b[3:4]

        h_b = h.astype(bf16)
        # edge projection precomputed in wrapper (independent of h)
        e = e_all_ref[l]                                 # [E, C] f32
        # gather source-node features per edge (one-hot matmul on the MXU)
        x_src = jnp.dot(src_ref[...], h_b, preferred_element_type=f32)
        msg = jnp.maximum(x_src + e, 0.0)                # ReLU(x_j + e_ij)
        # scatter-add messages onto target nodes (transposed one-hot, MXU)
        agg = jnp.dot(dstt_ref[...], msg.astype(bf16), preferred_element_type=f32)

        t = one_plus_eps * h + agg
        # GINE nn: Linear(+folded BN) -> LeakyReLU -> Linear(+folded outer BN)
        t = jnp.dot(t.astype(bf16), w1_ref[l], preferred_element_type=f32) + b1
        t = _leaky(t)
        t = jnp.dot(t.astype(bf16), w2_ref[l], preferred_element_type=f32) + b2
        h = _leaky(t)                                    # outer LeakyReLU

    # classifier (BNs folded, Dropout = identity in eval)
    z = jnp.dot(h.astype(bf16), w1c_ref[...],
                preferred_element_type=f32) + cb_ref[0:1, :]
    z = _leaky(z)
    z = jnp.dot(z.astype(bf16), w2c_ref[...],
                preferred_element_type=f32) + cb_ref[1:2, :]
    z = _leaky(z)
    # lane-dense (1, N) output: w3_row [1,M] (NT) z [N,M] -> [1, N]
    out = jax.lax.dot_general(w3r_ref[...], z.astype(jnp.bfloat16),
                              dimension_numbers=(((1,), (1,)), ((), ())),
                              preferred_element_type=f32)
    out_ref[...] = out + cb_ref[2:3, 0:1]


def m2_forward_pallas(x, edge_index, edge_attr, conv, cls):
    n = x.shape[0]
    n_layers, _, c = conv['we'].shape

    # pad node features (layer-0 in_channels) up to C so h has a fixed width
    x_pad = jnp.zeros((n, c), jnp.float32).at[:, :x.shape[1]].set(x)
    node_ids = jnp.arange(n, dtype=edge_index.dtype)
    src_oh = (edge_index[0][:, None] == node_ids[None, :]).astype(jnp.bfloat16)   # [E, N]
    dst_oh_t = (node_ids[:, None] == edge_index[1][None, :]).astype(jnp.bfloat16)  # [N, E]
    ea = edge_attr.astype(jnp.bfloat16)

    # Hoisted edge projection for ALL layers (does not depend on h): [L, E, C]
    e_all = jnp.einsum('ef,lfc->lec', ea, conv['we'],
                       preferred_element_type=jnp.float32) + conv['bias'][:, 0:1, :]

    vmem = pltpu.MemorySpace.VMEM
    args = (x_pad, src_oh, dst_oh_t, e_all,
            conv['w1'], conv['w2'], conv['bias'],
            cls['w1'], cls['w2'], cls['w3_row'], cls['bias'])

    out = pl.pallas_call(
        fused_kernel,
        in_specs=[pl.BlockSpec(memory_space=vmem) for _ in args],
        out_specs=pl.BlockSpec(memory_space=vmem),
        out_shape=jax.ShapeDtypeStruct((1, n), jnp.float32),
        compiler_params=pltpu.CompilerParams(vmem_limit_bytes=32 * 1024 * 1024),
    )(*args)
    return out.reshape(-1)                               # torch.flatten(x)


# ----------------------------------------------------------------------------
# Deterministic parameter initialization (shapes follow M2.__init__), with
# eval-mode BatchNorm folded into the adjacent Linear at init time.
# ----------------------------------------------------------------------------
def init_linear(key, fan_in, fan_out):
    kw, kb = jax.random.split(key)
    w = jax.random.normal(kw, (fan_in, fan_out), jnp.float32) / np.sqrt(fan_in)
    b = 0.01 * jax.random.normal(kb, (1, fan_out), jnp.float32)
    return w, b


def init_bn(key, c):
    kg, kb, km, kv = jax.random.split(key, 4)
    gamma = 1.0 + 0.1 * jax.random.normal(kg, (1, c), jnp.float32)
    beta = 0.1 * jax.random.normal(kb, (1, c), jnp.float32)
    mean = 0.1 * jax.random.normal(km, (1, c), jnp.float32)
    var = 1.0 + 0.1 * jnp.abs(jax.random.normal(kv, (1, c), jnp.float32))
    scale = gamma / jnp.sqrt(var + BN_EPS)
    shift = beta - mean * scale
    return scale, shift


def init_model(key, f_node, f_edge, c_conv, n_conv, c_mlp):
    c = c_conv
    we_l, w1_l, w2_l, bias_l = [], [], [], []
    cin = f_node
    for i in range(n_conv):
        key, k0, k1, k2, k3, k4 = jax.random.split(key, 6)
        we, be = init_linear(k0, f_edge, cin)            # GINEConv.lin
        w1, b1 = init_linear(k1, cin, c)
        s1, t1 = init_bn(k2, c)                          # BN inside GINE nn
        w2, b2 = init_linear(k3, c, c)
        if i != n_conv - 1:                              # outer BatchNorm list
            sp, tp = init_bn(k4, c)
        else:                                            # not applied on last layer
            sp = jnp.ones((1, c), jnp.float32)
            tp = jnp.zeros((1, c), jnp.float32)
        # fold eval-mode BN affines into the Linears
        w1f = w1 * s1
        b1f = b1 * s1 + t1
        w2f = w2 * sp
        b2f = b2 * sp + tp
        # pad layer-0 (in_channels = f_node) with zeros up to C so layers stack
        if cin != c:
            we = jnp.pad(we, ((0, 0), (0, c - cin)))
            be = jnp.pad(be, ((0, 0), (0, c - cin)))
            w1f = jnp.pad(w1f, ((0, c - cin), (0, 0)))
        eps = 0.05 * (i + 1)                             # GINEConv train_eps=True
        we_l.append(we)
        w1_l.append(w1f)
        w2_l.append(w2f)
        bias_l.append(jnp.concatenate(
            [be, b1f, b2f, jnp.full((1, c), 1.0 + eps, jnp.float32)], axis=0))
        cin = c

    conv = dict(
        we=jnp.stack(we_l).astype(jnp.bfloat16),         # [L, Fe, C]
        w1=jnp.stack(w1_l).astype(jnp.bfloat16),         # [L, C, C]
        w2=jnp.stack(w2_l).astype(jnp.bfloat16),         # [L, C, C]
        bias=jnp.stack(bias_l),                          # [L, 4, C] float32
    )

    key, k0, k1, k2, k3, k4 = jax.random.split(key, 6)
    w1c, b1c = init_linear(k0, c, c_mlp)
    s1, t1 = init_bn(k1, c_mlp)
    w2c, b2c = init_linear(k2, c_mlp, c_mlp)
    s2, t2 = init_bn(k3, c_mlp)
    w3c, b3c = init_linear(k4, c_mlp, 1)
    cls = dict(
        w1=(w1c * s1).astype(jnp.bfloat16),              # [C, M]
        w2=(w2c * s2).astype(jnp.bfloat16),              # [M, M]
        w3_row=w3c.T.astype(jnp.bfloat16),               # [1, M] lane-dense out
        bias=jnp.concatenate([b1c * s1 + t1, b2c * s2 + t2,
                              jnp.broadcast_to(b3c, (1, c_mlp))], axis=0),  # [3, M]
    )
    return conv, cls


# ----------------------------------------------------------------------------
# Pure-JAX reference (gather / segment-sum path, same bf16 casts) for checking
# ----------------------------------------------------------------------------
def m2_forward_ref(x, edge_index, edge_attr, conv, cls):
    f32, bf = jnp.float32, (lambda a: a.astype(jnp.bfloat16))
    n = x.shape[0]
    n_layers, _, c = conv['we'].shape
    h = jnp.zeros((n, c), f32).at[:, :x.shape[1]].set(x)
    src, dst = edge_index[0], edge_index[1]
    ea = bf(edge_attr)
    for l in range(n_layers):
        be = conv['bias'][l, 0:1]
        b1 = conv['bias'][l, 1:2]
        b2 = conv['bias'][l, 2:3]
        ope = conv['bias'][l, 3:4]
        e = jnp.dot(ea, conv['we'][l], preferred_element_type=f32) + be
        x_src = bf(h).astype(f32)[src]
        msg = jnp.maximum(x_src + e, 0.0)
        agg = jnp.zeros((n, c), f32).at[dst].add(bf(msg).astype(f32))
        t = ope * h + agg
        t = _leaky(jnp.dot(bf(t), conv['w1'][l], preferred_element_type=f32) + b1)
        h = _leaky(jnp.dot(bf(t), conv['w2'][l], preferred_element_type=f32) + b2)
    cb = cls['bias']
    z = _leaky(jnp.dot(bf(h), cls['w1'], preferred_element_type=f32) + cb[0:1])
    z = _leaky(jnp.dot(bf(z), cls['w2'], preferred_element_type=f32) + cb[1:2])
    out = jnp.dot(bf(z), cls['w3_row'].T, preferred_element_type=f32) + cb[2, 0]
    return out.reshape(-1)


if __name__ == "__main__":
    key = jax.random.PRNGKey(0)
    N, E = 32, 64                 # nodes (atoms), directed edges (bonds)
    F_NODE, F_EDGE = 8, 4
    C_CONV, N_CONV, C_MLP = 64, 3, 64

    key, kx, ks, kd, ke, kp = jax.random.split(key, 6)
    x = jax.random.normal(kx, (N, F_NODE), jnp.float32)
    edge_index = jnp.stack([jax.random.randint(ks, (E,), 0, N),
                            jax.random.randint(kd, (E,), 0, N)])       # [2, E]
    edge_attr = jax.random.normal(ke, (E, F_EDGE), jnp.float32)

    conv, cls = init_model(kp, F_NODE, F_EDGE, C_CONV, N_CONV, C_MLP)

    out = m2_forward_pallas(x, edge_index, edge_attr, conv, cls)
    out = jax.block_until_ready(out)

    ref = m2_forward_ref(x, edge_index, edge_attr, conv, cls)
    assert out.shape == (N,)
    np.testing.assert_allclose(np.asarray(out), np.asarray(ref),
                               rtol=2e-3, atol=2e-3)
    print("KERNEL_OK")
</pallas_src>

<mosaic_0001>
module attributes {stable_mosaic.version = 11 : i64} {
  func.func @fused_kernel(%arg0: memref<32x64xf32, #tpu.memory_space<vmem>>, %arg1: memref<64x32xbf16, #tpu.memory_space<vmem>>, %arg2: memref<32x64xbf16, #tpu.memory_space<vmem>>, %arg3: memref<3x64x64xf32, #tpu.memory_space<vmem>>, %arg4: memref<3x64x64xbf16, #tpu.memory_space<vmem>>, %arg5: memref<3x64x64xbf16, #tpu.memory_space<vmem>>, %arg6: memref<3x4x64xf32, #tpu.memory_space<vmem>>, %arg7: memref<64x64xbf16, #tpu.memory_space<vmem>>, %arg8: memref<64x64xbf16, #tpu.memory_space<vmem>>, %arg9: memref<1x64xbf16, #tpu.memory_space<vmem>>, %arg10: memref<3x64xf32, #tpu.memory_space<vmem>>, %arg11: memref<1x32xf32, #tpu.memory_space<vmem>>) attributes {dimension_semantics = [], scalar_prefetch = 0 : i64, scratch_operands = 0 : i64, tpu.core_type = #tpu.core_type<tc>} {
    %c0 = arith.constant 0 : index
    %c0_0 = arith.constant 0 : index
    %0 = vector.load %arg0[%c0, %c0_0] : memref<32x64xf32, #tpu.memory_space<vmem>>, vector<32x64xf32>
    %c0_1 = arith.constant 0 : index
    %c0_2 = arith.constant 0 : index
    %c0_3 = arith.constant 0 : index
    %1 = vector.load %arg6[%c0_1, %c0_2, %c0_3] : memref<3x4x64xf32, #tpu.memory_space<vmem>>, vector<1x4x64xf32>
    %2 = vector.shape_cast %1 : vector<1x4x64xf32> to vector<4x64xf32>
    %3 = vector.extract_strided_slice %2 {offsets = [1, 0], sizes = [1, 64], strides = [1, 1]} : vector<4x64xf32> to vector<1x64xf32>
    %4 = vector.extract_strided_slice %2 {offsets = [2, 0], sizes = [1, 64], strides = [1, 1]} : vector<4x64xf32> to vector<1x64xf32>
    %5 = vector.extract_strided_slice %2 {offsets = [3, 0], sizes = [1, 64], strides = [1, 1]} : vector<4x64xf32> to vector<1x64xf32>
    %6 = arith.truncf %0 : vector<32x64xf32> to vector<32x64xbf16>
    %c0_4 = arith.constant 0 : index
    %c0_5 = arith.constant 0 : index
    %c0_6 = arith.constant 0 : index
    %7 = vector.load %arg3[%c0_4, %c0_5, %c0_6] : memref<3x64x64xf32, #tpu.memory_space<vmem>>, vector<1x64x64xf32>
    %8 = vector.shape_cast %7 : vector<1x64x64xf32> to vector<64x64xf32>
    %c0_7 = arith.constant 0 : index
    %c0_8 = arith.constant 0 : index
    %9 = vector.load %arg1[%c0_7, %c0_8] : memref<64x32xbf16, #tpu.memory_space<vmem>>, vector<64x32xbf16>
    %cst = arith.constant dense<0.000000e+00> : vector<64x64xf32>
    %10 = tpu.matmul %9, %6, %cst {dimension_numbers = #tpu.dot_dimension_numbers<[1], [0], [0], [1], [0, 0, 1, 1], [], []>} : vector<64x32xbf16>, vector<32x64xbf16>, vector<64x64xf32> -> vector<64x64xf32>
    %11 = arith.addf %10, %8 : vector<64x64xf32>
    %cst_9 = arith.constant 0.000000e+00 : f32
    %12 = vector.broadcast %cst_9 : f32 to vector<64x64xf32>
    %13 = arith.maximumf %11, %12 : vector<64x64xf32>
    %c0_10 = arith.constant 0 : index
    %c0_11 = arith.constant 0 : index
    %14 = vector.load %arg2[%c0_10, %c0_11] : memref<32x64xbf16, #tpu.memory_space<vmem>>, vector<32x64xbf16>
    %15 = arith.truncf %13 : vector<64x64xf32> to vector<64x64xbf16>
    %cst_12 = arith.constant dense<0.000000e+00> : vector<32x64xf32>
    %16 = tpu.matmul %14, %15, %cst_12 {dimension_numbers = #tpu.dot_dimension_numbers<[1], [0], [0], [1], [0, 0, 1, 1], [], []>} : vector<32x64xbf16>, vector<64x64xbf16>, vector<32x64xf32> -> vector<32x64xf32>
    %17 = vector.broadcast %5 : vector<1x64xf32> to vector<32x64xf32>
    %18 = arith.mulf %17, %0 : vector<32x64xf32>
    %19 = arith.addf %18, %16 : vector<32x64xf32>
    %20 = arith.truncf %19 : vector<32x64xf32> to vector<32x64xbf16>
    %c0_13 = arith.constant 0 : index
    %c0_14 = arith.constant 0 : index
    %c0_15 = arith.constant 0 : index
    %21 = vector.load %arg4[%c0_13, %c0_14, %c0_15] : memref<3x64x64xbf16, #tpu.memory_space<vmem>>, vector<1x64x64xbf16>
    %22 = vector.shape_cast %21 : vector<1x64x64xbf16> to vector<64x64xbf16>
    %cst_16 = arith.constant dense<0.000000e+00> : vector<32x64xf32>
    %23 = tpu.matmul %20, %22, %cst_16 {dimension_numbers = #tpu.dot_dimension_numbers<[1], [0], [0], [1], [0, 0, 1, 1], [], []>} : vector<32x64xbf16>, vector<64x64xbf16>, vector<32x64xf32> -> vector<32x64xf32>
    %24 = vector.broadcast %3 : vector<1x64xf32> to vector<32x64xf32>
    %25 = arith.addf %23, %24 : vector<32x64xf32>
    %cst_17 = arith.constant 0.000000e+00 : f32
    %26 = vector.broadcast %cst_17 : f32 to vector<32x64xf32>
    %27 = arith.cmpf ogt, %25, %26 : vector<32x64xf32>
    %cst_18 = arith.constant 0.00999999977 : f32
    %28 = vector.broadcast %cst_18 : f32 to vector<32x64xf32>
    %29 = arith.mulf %28, %25 : vector<32x64xf32>
    %30 = arith.select %27, %25, %29 : vector<32x64xi1>, vector<32x64xf32>
    %31 = arith.truncf %30 : vector<32x64xf32> to vector<32x64xbf16>
    %c0_19 = arith.constant 0 : index
    %c0_20 = arith.constant 0 : index
    %c0_21 = arith.constant 0 : index
    %32 = vector.load %arg5[%c0_19, %c0_20, %c0_21] : memref<3x64x64xbf16, #tpu.memory_space<vmem>>, vector<1x64x64xbf16>
    %33 = vector.shape_cast %32 : vector<1x64x64xbf16> to vector<64x64xbf16>
    %cst_22 = arith.constant dense<0.000000e+00> : vector<32x64xf32>
    %34 = tpu.matmul %31, %33, %cst_22 {dimension_numbers = #tpu.dot_dimension_numbers<[1], [0], [0], [1], [0, 0, 1, 1], [], []>} : vector<32x64xbf16>, vector<64x64xbf16>, vector<32x64xf32> -> vector<32x64xf32>
    %35 = vector.broadcast %4 : vector<1x64xf32> to vector<32x64xf32>
    %36 = arith.addf %34, %35 : vector<32x64xf32>
    %cst_23 = arith.constant 0.000000e+00 : f32
    %37 = vector.broadcast %cst_23 : f32 to vector<32x64xf32>
    %38 = arith.cmpf ogt, %36, %37 : vector<32x64xf32>
    %cst_24 = arith.constant 0.00999999977 : f32
    %39 = vector.broadcast %cst_24 : f32 to vector<32x64xf32>
    %40 = arith.mulf %39, %36 : vector<32x64xf32>
    %41 = arith.select %38, %36, %40 : vector<32x64xi1>, vector<32x64xf32>
    %c1 = arith.constant 1 : index
    %c0_25 = arith.constant 0 : index
    %c0_26 = arith.constant 0 : index
    %42 = vector.load %arg6[%c1, %c0_25, %c0_26] : memref<3x4x64xf32, #tpu.memory_space<vmem>>, vector<1x4x64xf32>
    %43 = vector.shape_cast %42 : vector<1x4x64xf32> to vector<4x64xf32>
    %44 = vector.extract_strided_slice %43 {offsets = [1, 0], sizes = [1, 64], strides = [1, 1]} : vector<4x64xf32> to vector<1x64xf32>
    %45 = vector.extract_strided_slice %43 {offsets = [2, 0], sizes = [1, 64], strides = [1, 1]} : vector<4x64xf32> to vector<1x64xf32>
    %46 = vector.extract_strided_slice %43 {offsets = [3, 0], sizes = [1, 64], strides = [1, 1]} : vector<4x64xf32> to vector<1x64xf32>
    %47 = arith.truncf %41 : vector<32x64xf32> to vector<32x64xbf16>
    %c1_27 = arith.constant 1 : index
    %c0_28 = arith.constant 0 : index
    %c0_29 = arith.constant 0 : index
    %48 = vector.load %arg3[%c1_27, %c0_28, %c0_29] : memref<3x64x64xf32, #tpu.memory_space<vmem>>, vector<1x64x64xf32>
    %49 = vector.shape_cast %48 : vector<1x64x64xf32> to vector<64x64xf32>
    %c0_30 = arith.constant 0 : index
    %c0_31 = arith.constant 0 : index
    %50 = vector.load %arg1[%c0_30, %c0_31] : memref<64x32xbf16, #tpu.memory_space<vmem>>, vector<64x32xbf16>
    %cst_32 = arith.constant dense<0.000000e+00> : vector<64x64xf32>
    %51 = tpu.matmul %50, %47, %cst_32 {dimension_numbers = #tpu.dot_dimension_numbers<[1], [0], [0], [1], [0, 0, 1, 1], [], []>} : vector<64x32xbf16>, vector<32x64xbf16>, vector<64x64xf32> -> vector<64x64xf32>
    %52 = arith.addf %51, %49 : vector<64x64xf32>
    %cst_33 = arith.constant 0.000000e+00 : f32
    %53 = vector.broadcast %cst_33 : f32 to vector<64x64xf32>
    %54 = arith.maximumf %52, %53 : vector<64x64xf32>
    %c0_34 = arith.constant 0 : index
    %c0_35 = arith.constant 0 : index
    %55 = vector.load %arg2[%c0_34, %c0_35] : memref<32x64xbf16, #tpu.memory_space<vmem>>, vector<32x64xbf16>
    %56 = arith.truncf %54 : vector<64x64xf32> to vector<64x64xbf16>
    %cst_36 = arith.constant dense<0.000000e+00> : vector<32x64xf32>
    %57 = tpu.matmul %55, %56, %cst_36 {dimension_numbers = #tpu.dot_dimension_numbers<[1], [0], [0], [1], [0, 0, 1, 1], [], []>} : vector<32x64xbf16>, vector<64x64xbf16>, vector<32x64xf32> -> vector<32x64xf32>
    %58 = vector.broadcast %46 : vector<1x64xf32> to vector<32x64xf32>
    %59 = arith.mulf %58, %41 : vector<32x64xf32>
    %60 = arith.addf %59, %57 : vector<32x64xf32>
    %61 = arith.truncf %60 : vector<32x64xf32> to vector<32x64xbf16>
    %c1_37 = arith.constant 1 : index
    %c0_38 = arith.constant 0 : index
    %c0_39 = arith.constant 0 : index
    %62 = vector.load %arg4[%c1_37, %c0_38, %c0_39] : memref<3x64x64xbf16, #tpu.memory_space<vmem>>, vector<1x64x64xbf16>
    %63 = vector.shape_cast %62 : vector<1x64x64xbf16> to vector<64x64xbf16>
    %cst_40 = arith.constant dense<0.000000e+00> : vector<32x64xf32>
    %64 = tpu.matmul %61, %63, %cst_40 {dimension_numbers = #tpu.dot_dimension_numbers<[1], [0], [0], [1], [0, 0, 1, 1], [], []>} : vector<32x64xbf16>, vector<64x64xbf16>, vector<32x64xf32> -> vector<32x64xf32>
    %65 = vector.broadcast %44 : vector<1x64xf32> to vector<32x64xf32>
    %66 = arith.addf %64, %65 : vector<32x64xf32>
    %cst_41 = arith.constant 0.000000e+00 : f32
    %67 = vector.broadcast %cst_41 : f32 to vector<32x64xf32>
    %68 = arith.cmpf ogt, %66, %67 : vector<32x64xf32>
    %cst_42 = arith.constant 0.00999999977 : f32
    %69 = vector.broadcast %cst_42 : f32 to vector<32x64xf32>
    %70 = arith.mulf %69, %66 : vector<32x64xf32>
    %71 = arith.select %68, %66, %70 : vector<32x64xi1>, vector<32x64xf32>
    %72 = arith.truncf %71 : vector<32x64xf32> to vector<32x64xbf16>
    %c1_43 = arith.constant 1 : index
    %c0_44 = arith.constant 0 : index
    %c0_45 = arith.constant 0 : index
    %73 = vector.load %arg5[%c1_43, %c0_44, %c0_45] : memref<3x64x64xbf16, #tpu.memory_space<vmem>>, vector<1x64x64xbf16>
    %74 = vector.shape_cast %73 : vector<1x64x64xbf16> to vector<64x64xbf16>
    %cst_46 = arith.constant dense<0.000000e+00> : vector<32x64xf32>
    %75 = tpu.matmul %72, %74, %cst_46 {dimension_numbers = #tpu.dot_dimension_numbers<[1], [0], [0], [1], [0, 0, 1, 1], [], []>} : vector<32x64xbf16>, vector<64x64xbf16>, vector<32x64xf32> -> vector<32x64xf32>
    %76 = vector.broadcast %45 : vector<1x64xf32> to vector<32x64xf32>
    %77 = arith.addf %75, %76 : vector<32x64xf32>
    %cst_47 = arith.constant 0.000000e+00 : f32
    %78 = vector.broadcast %cst_47 : f32 to vector<32x64xf32>
    %79 = arith.cmpf ogt, %77, %78 : vector<32x64xf32>
    %cst_48 = arith.constant 0.00999999977 : f32
    %80 = vector.broadcast %cst_48 : f32 to vector<32x64xf32>
    %81 = arith.mulf %80, %77 : vector<32x64xf32>
    %82 = arith.select %79, %77, %81 : vector<32x64xi1>, vector<32x64xf32>
    %c2 = arith.constant 2 : index
    %c0_49 = arith.constant 0 : index
    %c0_50 = arith.constant 0 : index
    %83 = vector.load %arg6[%c2, %c0_49, %c0_50] : memref<3x4x64xf32, #tpu.memory_space<vmem>>, vector<1x4x64xf32>
    %84 = vector.shape_cast %83 : vector<1x4x64xf32> to vector<4x64xf32>
    %85 = vector.extract_strided_slice %84 {offsets = [1, 0], sizes = [1, 64], strides = [1, 1]} : vector<4x64xf32> to vector<1x64xf32>
    %86 = vector.extract_strided_slice %84 {offsets = [2, 0], sizes = [1, 64], strides = [1, 1]} : vector<4x64xf32> to vector<1x64xf32>
    %87 = vector.extract_strided_slice %84 {offsets = [3, 0], sizes = [1, 64], strides = [1, 1]} : vector<4x64xf32> to vector<1x64xf32>
    %88 = arith.truncf %82 : vector<32x64xf32> to vector<32x64xbf16>
    %c2_51 = arith.constant 2 : index
    %c0_52 = arith.constant 0 : index
    %c0_53 = arith.constant 0 : index
    %89 = vector.load %arg3[%c2_51, %c0_52, %c0_53] : memref<3x64x64xf32, #tpu.memory_space<vmem>>, vector<1x64x64xf32>
    %90 = vector.shape_cast %89 : vector<1x64x64xf32> to vector<64x64xf32>
    %c0_54 = arith.constant 0 : index
    %c0_55 = arith.constant 0 : index
    %91 = vector.load %arg1[%c0_54, %c0_55] : memref<64x32xbf16, #tpu.memory_space<vmem>>, vector<64x32xbf16>
    %cst_56 = arith.constant dense<0.000000e+00> : vector<64x64xf32>
    %92 = tpu.matmul %91, %88, %cst_56 {dimension_numbers = #tpu.dot_dimension_numbers<[1], [0], [0], [1], [0, 0, 1, 1], [], []>} : vector<64x32xbf16>, vector<32x64xbf16>, vector<64x64xf32> -> vector<64x64xf32>
    %93 = arith.addf %92, %90 : vector<64x64xf32>
    %cst_57 = arith.constant 0.000000e+00 : f32
    %94 = vector.broadcast %cst_57 : f32 to vector<64x64xf32>
    %95 = arith.maximumf %93, %94 : vector<64x64xf32>
    %c0_58 = arith.constant 0 : index
    %c0_59 = arith.constant 0 : index
    %96 = vector.load %arg2[%c0_58, %c0_59] : memref<32x64xbf16, #tpu.memory_space<vmem>>, vector<32x64xbf16>
    %97 = arith.truncf %95 : vector<64x64xf32> to vector<64x64xbf16>
    %cst_60 = arith.constant dense<0.000000e+00> : vector<32x64xf32>
    %98 = tpu.matmul %96, %97, %cst_60 {dimension_numbers = #tpu.dot_dimension_numbers<[1], [0], [0], [1], [0, 0, 1, 1], [], []>} : vector<32x64xbf16>, vector<64x64xbf16>, vector<32x64xf32> -> vector<32x64xf32>
    %99 = vector.broadcast %87 : vector<1x64xf32> to vector<32x64xf32>
    %100 = arith.mulf %99, %82 : vector<32x64xf32>
    %101 = arith.addf %100, %98 : vector<32x64xf32>
    %102 = arith.truncf %101 : vector<32x64xf32> to vector<32x64xbf16>
    %c2_61 = arith.constant 2 : index
    %c0_62 = arith.constant 0 : index
    %c0_63 = arith.constant 0 : index
    %103 = vector.load %arg4[%c2_61, %c0_62, %c0_63] : memref<3x64x64xbf16, #tpu.memory_space<vmem>>, vector<1x64x64xbf16>
    %104 = vector.shape_cast %103 : vector<1x64x64xbf16> to vector<64x64xbf16>
    %cst_64 = arith.constant dense<0.000000e+00> : vector<32x64xf32>
    %105 = tpu.matmul %102, %104, %cst_64 {dimension_numbers = #tpu.dot_dimension_numbers<[1], [0], [0], [1], [0, 0, 1, 1], [], []>} : vector<32x64xbf16>, vector<64x64xbf16>, vector<32x64xf32> -> vector<32x64xf32>
    %106 = vector.broadcast %85 : vector<1x64xf32> to vector<32x64xf32>
    %107 = arith.addf %105, %106 : vector<32x64xf32>
    %cst_65 = arith.constant 0.000000e+00 : f32
    %108 = vector.broadcast %cst_65 : f32 to vector<32x64xf32>
    %109 = arith.cmpf ogt, %107, %108 : vector<32x64xf32>
    %cst_66 = arith.constant 0.00999999977 : f32
    %110 = vector.broadcast %cst_66 : f32 to vector<32x64xf32>
    %111 = arith.mulf %110, %107 : vector<32x64xf32>
    %112 = arith.select %109, %107, %111 : vector<32x64xi1>, vector<32x64xf32>
    %113 = arith.truncf %112 : vector<32x64xf32> to vector<32x64xbf16>
    %c2_67 = arith.constant 2 : index
    %c0_68 = arith.constant 0 : index
    %c0_69 = arith.constant 0 : index
    %114 = vector.load %arg5[%c2_67, %c0_68, %c0_69] : memref<3x64x64xbf16, #tpu.memory_space<vmem>>, vector<1x64x64xbf16>
    %115 = vector.shape_cast %114 : vector<1x64x64xbf16> to vector<64x64xbf16>
    %cst_70 = arith.constant dense<0.000000e+00> : vector<32x64xf32>
    %116 = tpu.matmul %113, %115, %cst_70 {dimension_numbers = #tpu.dot_dimension_numbers<[1], [0], [0], [1], [0, 0, 1, 1], [], []>} : vector<32x64xbf16>, vector<64x64xbf16>, vector<32x64xf32> -> vector<32x64xf32>
    %117 = vector.broadcast %86 : vector<1x64xf32> to vector<32x64xf32>
    %118 = arith.addf %116, %117 : vector<32x64xf32>
    %cst_71 = arith.constant 0.000000e+00 : f32
    %119 = vector.broadcast %cst_71 : f32 to vector<32x64xf32>
    %120 = arith.cmpf ogt, %118, %119 : vector<32x64xf32>
    %cst_72 = arith.constant 0.00999999977 : f32
    %121 = vector.broadcast %cst_72 : f32 to vector<32x64xf32>
    %122 = arith.mulf %121, %118 : vector<32x64xf32>
    %123 = arith.select %120, %118, %122 : vector<32x64xi1>, vector<32x64xf32>
    %124 = arith.truncf %123 : vector<32x64xf32> to vector<32x64xbf16>
    %c0_73 = arith.constant 0 : index
    %c0_74 = arith.constant 0 : index
    %125 = vector.load %arg7[%c0_73, %c0_74] : memref<64x64xbf16, #tpu.memory_space<vmem>>, vector<64x64xbf16>
    %cst_75 = arith.constant dense<0.000000e+00> : vector<32x64xf32>
    %126 = tpu.matmul %124, %125, %cst_75 {dimension_numbers = #tpu.dot_dimension_numbers<[1], [0], [0], [1], [0, 0, 1, 1], [], []>} : vector<32x64xbf16>, vector<64x64xbf16>, vector<32x64xf32> -> vector<32x64xf32>
    %c0_76 = arith.constant 0 : index
    %c0_77 = arith.constant 0 : index
    %127 = vector.load %arg10[%c0_76, %c0_77] : memref<3x64xf32, #tpu.memory_space<vmem>>, vector<1x64xf32>
    %128 = vector.broadcast %127 : vector<1x64xf32> to vector<32x64xf32>
    %129 = arith.addf %126, %128 : vector<32x64xf32>
    %cst_78 = arith.constant 0.000000e+00 : f32
    %130 = vector.broadcast %cst_78 : f32 to vector<32x64xf32>
    %131 = arith.cmpf ogt, %129, %130 : vector<32x64xf32>
    %cst_79 = arith.constant 0.00999999977 : f32
    %132 = vector.broadcast %cst_79 : f32 to vector<32x64xf32>
    %133 = arith.mulf %132, %129 : vector<32x64xf32>
    %134 = arith.select %131, %129, %133 : vector<32x64xi1>, vector<32x64xf32>
    %135 = arith.truncf %134 : vector<32x64xf32> to vector<32x64xbf16>
    %c0_80 = arith.constant 0 : index
    %c0_81 = arith.constant 0 : index
    %136 = vector.load %arg8[%c0_80, %c0_81] : memref<64x64xbf16, #tpu.memory_space<vmem>>, vector<64x64xbf16>
    %cst_82 = arith.constant dense<0.000000e+00> : vector<32x64xf32>
    %137 = tpu.matmul %135, %136, %cst_82 {dimension_numbers = #tpu.dot_dimension_numbers<[1], [0], [0], [1], [0, 0, 1, 1], [], []>} : vector<32x64xbf16>, vector<64x64xbf16>, vector<32x64xf32> -> vector<32x64xf32>
    %c1_83 = arith.constant 1 : index
    %c0_84 = arith.constant 0 : index
    %138 = vector.load %arg10[%c1_83, %c0_84] : memref<3x64xf32, #tpu.memory_space<vmem>>, vector<1x64xf32>
    %139 = vector.broadcast %138 : vector<1x64xf32> to vector<32x64xf32>
    %140 = arith.addf %137, %139 : vector<32x64xf32>
    %cst_85 = arith.constant 0.000000e+00 : f32
    %141 = vector.broadcast %cst_85 : f32 to vector<32x64xf32>
    %142 = arith.cmpf ogt, %140, %141 : vector<32x64xf32>
    %cst_86 = arith.constant 0.00999999977 : f32
    %143 = vector.broadcast %cst_86 : f32 to vector<32x64xf32>
    %144 = arith.mulf %143, %140 : vector<32x64xf32>
    %145 = arith.select %142, %140, %144 : vector<32x64xi1>, vector<32x64xf32>
    %c0_87 = arith.constant 0 : index
    %c0_88 = arith.constant 0 : index
    %146 = vector.load %arg9[%c0_87, %c0_88] : memref<1x64xbf16, #tpu.memory_space<vmem>>, vector<1x64xbf16>
    %147 = arith.truncf %145 : vector<32x64xf32> to vector<32x64xbf16>
    %cst_89 = arith.constant dense<0.000000e+00> : vector<1x32xf32>
    %148 = tpu.matmul %146, %147, %cst_89 {dimension_numbers = #tpu.dot_dimension_numbers<[1], [1], [0], [0], [0, 0, 1, 0], [], []>} : vector<1x64xbf16>, vector<32x64xbf16>, vector<1x32xf32> -> vector<1x32xf32>
    %c2_90 = arith.constant 2 : index
    %c0_91 = arith.constant 0 : index
    %149 = vector.load %arg10[%c2_90, %c0_91] : memref<3x64xf32, #tpu.memory_space<vmem>>, vector<1x1xf32>
    %150 = vector.broadcast %149 : vector<1x1xf32> to vector<1x32xf32>
    %151 = arith.addf %148, %150 : vector<1x32xf32>
    %c0_92 = arith.constant 0 : index
    %c0_93 = arith.constant 0 : index
    %152 = vector.load %arg11[%c0_92, %c0_93] : memref<1x32xf32, #tpu.memory_space<vmem>>, vector<1x32xf32>
    tpu.vector_store %arg11[%c0_92, %c0_93], %151 {strides = array<i32>} : memref<1x32xf32, #tpu.memory_space<vmem>>, vector<1x32xf32>,
    return
  }
}

</mosaic_0001>

<bundles_post_ra>
// kernel: tpu_custom_call.1
= control target key start
LH: loop header
LB: loop body
LE: loop exit
PB: predicated region body
PF: predicated region fallthrough
CT: control target
= control target key end

     0   :  { %16 = vsyncpa [#allocation3], 0  ;;  %s2474_s0 = inlined_call_operand.vmem [shape: f32[32,64], index: 0, kind: input, shape index: {}]   ;;  %s2475_s1 = inlined_call_operand.vmem [shape: bf16[64,32], index: 1, kind: input, shape index: {}]   ;;  %s2476_s2 = inlined_call_operand.hbm [shape: bf16[32,64], index: 2, kind: input, shape index: {}]   ;;  %s2477_s3 = inlined_call_operand.hbm [shape: f32[3,64,64], index: 3, kind: input, shape index: {}]   ;;  %s2478_s4 = inlined_call_operand.hbm [shape: bf16[3,64,64], index: 4, kind: input, shape index: {}]   ;;  %s2479_s5 = inlined_call_operand.hbm [shape: bf16[3,64,64], index: 5, kind: input, shape index: {}]   ;;  %s2480_s6 = inlined_call_operand.hbm [shape: f32[3,4,64], index: 6, kind: input, shape index: {}]   ;;  %s2481_s7 = inlined_call_operand.vmem [shape: bf16[64,64], index: 7, kind: input, shape index: {}]   ;;  %s2482_s8 = inlined_call_operand.hbm [shape: bf16[64,64], index: 8, kind: input, shape index: {}]   ;;  %s2483_s9 = inlined_call_operand.vmem [shape: bf16[1,64], index: 9, kind: input, shape index: {}]   ;;  %s2484_s10 = inlined_call_operand.vmem [shape: f32[3,64], index: 10, kind: input, shape index: {}]   ;;  %s2485_s11 = inlined_call_operand.hbm [shape: f32[1,32], index: 11, kind: output, shape index: {}]  }
   0x1   :  { %17 = vsyncpa [#allocation6], 0 }
   0x2   :  { %18 = vsyncpa [#allocation9], 0 }
   0x3   :  { %19 = vsyncpa [#allocation12], 0 }
   0x4   :  { %20 = vsyncpa [#allocation4], 0  ;;  %s2118_s17 = smov [#allocation5]   ;;  %s1954_s21 = scalar_lea.hbm %s2477_s3, 3072 }
   0x5   :  { %s42_s18 = sshll.u32 %s2118_s17, 4  ;;  %p1955_p0 = scmp.ne.s32.totalorder %s2477_s3, %s1954_s21  ;;  %s43_s18 = int_to_ptr.vmem [resolvable:$true] %s42_s18 }
   0x6   :  { %p1958_p1 = scmp.lt.u32.totalorder %s1954_s21, %s2477_s3 }
   0x8   :  { %p1960_p2 = pnand %p1958_p1, %p1955_p0 }
   0xa   :  { %1963 = shalt.err (!%p1960_p2)
}
   0xb   :  { %s1964_s26 = scalar_lea.vmem %s43_s18, 3072  ;;  %p1969_p4 = scmp.lt.s32.totalorder %s43_s18, %s43_s18 }
   0xc   :  { %p1965_p3 = scmp.ne.s32.totalorder %s43_s18, %s1964_s26  ;;  %p1970_p5 = scmp.lt.s32.totalorder %s1964_s26, %s1964_s26 }
   0xe   :  { %p1971_p6 = por %p1970_p5, %p1969_p4 }
  0x10   :  { %p1972_p7 = pnand %p1971_p6, %p1965_p3 }
  0x12   :  { %1975 = shalt.err (!%p1972_p7)
}
  0x13   :  { %s2119_s27 = smov 128   ;;  %s2120_s28 = smov 8  }
  0x14   :  { %48 = dma.hbm_to_vmem [thread:$0]  %s2477_s3, 3072, %s43_s18, [#allocation6], %s2119_s27, %s2119_s27, %s2120_s28  }
  0x15   :  { %s2121_s12 = smov [#allocation8]   ;;  %s2122_s14 = smov [#allocation2]  }
  0x16   :  { %s66_s13 = sshll.u32 %s2121_s12, 4  ;;  %s30_s15 = sshll.u32 %s2122_s14, 4  ;;  %s67_s13 = int_to_ptr.vmem [resolvable:$true] %s66_s13  ;;  %s31_s15 = int_to_ptr.vmem [resolvable:$true] %s30_s15 }
  0x17   :  { %s1976_s19 = scalar_lea.hbm %s2479_s5, 1536 }
  0x18   :  { %p1977_p8 = scmp.ne.s32.totalorder %s2479_s5, %s1976_s19  ;;  %p1980_p9 = scmp.lt.u32.totalorder %s1976_s19, %s2479_s5 }
  0x1a   :  { %p1982_p10 = pnand %p1980_p9, %p1977_p8 }
  0x1c   :  { %1985 = shalt.err (!%p1982_p10)
}
  0x1d   :  { %s1986_s3 = scalar_lea.vmem %s67_s13, 1536  ;;  %p1991_p12 = scmp.lt.s32.totalorder %s67_s13, %s67_s13 }
  0x1e   :  { %p1987_p11 = scmp.ne.s32.totalorder %s67_s13, %s1986_s3  ;;  %p1992_p13 = scmp.lt.s32.totalorder %s1986_s3, %s1986_s3 }
  0x20   :  { %p1993_p0 = por %p1992_p13, %p1991_p12 }
  0x22   :  { %p1994_p1 = pnand %p1993_p0, %p1987_p11 }
  0x24   :  { %1997 = shalt.err (!%p1994_p1)
}
  0x25   :  { %s2123_s18 = smov 64   ;;  %s2124_s24 = smov 4  }
  0x26   :  { %72 = dma.hbm_to_vmem [thread:$0]  %s2479_s5, 1536, %s67_s13, [#allocation9], %s2123_s18, %s2123_s18, %s2124_s24  }
  0x27   :  { %s1998_s29 = scalar_lea.hbm %s2476_s2, 256 }
  0x28   :  { %p1999_p2 = scmp.ne.s32.totalorder %s2476_s2, %s1998_s29  ;;  %p2002_p3 = scmp.lt.u32.totalorder %s1998_s29, %s2476_s2 }
  0x2a   :  { %p2004_p4 = pnand %p2002_p3, %p1999_p2 }
  0x2c   :  { %2007 = shalt.err (!%p2004_p4)
}
  0x2d   :  { %s2008_s17 = scalar_lea.vmem %s31_s15, 256  ;;  %p2013_p6 = scmp.lt.s32.totalorder %s31_s15, %s31_s15 }
  0x2e   :  { %p2009_p5 = scmp.ne.s32.totalorder %s31_s15, %s2008_s17  ;;  %p2014_p7 = scmp.lt.s32.totalorder %s2008_s17, %s2008_s17 }
  0x30   :  { %p2015_p8 = por %p2014_p7, %p2013_p6 }
  0x32   :  { %p2016_p9 = pnand %p2015_p8, %p2009_p5 }
  0x34   :  { %2019 = shalt.err (!%p2016_p9)
}
  0x35   :  { %36 = dma.hbm_to_vmem [thread:$0]  %s2476_s2, 256, %s31_s15, [#allocation3], %s2123_s18, %s2123_s18, %s2124_s24  }
  0x36   :  { %s2125_s19 = smov [#allocation7]   ;;  %s2126_s21 = smov [#allocation10]  }
  0x37   :  { %s54_s20 = sshll.u32 %s2125_s19, 4  ;;  %s78_s22 = sshll.u32 %s2126_s21, 4  ;;  %s55_s20 = int_to_ptr.vmem [resolvable:$true] %s54_s20  ;;  %s79_s22 = int_to_ptr.vmem [resolvable:$true] %s78_s22 }
  0x38   :  { %s2020_s25 = scalar_lea.hbm %s2478_s4, 1536 }
  0x39   :  { %p2021_p10 = scmp.ne.s32.totalorder %s2478_s4, %s2020_s25  ;;  %p2024_p11 = scmp.lt.u32.totalorder %s2020_s25, %s2478_s4 }
  0x3b   :  { %p2026_p12 = pnand %p2024_p11, %p2021_p10 }
  0x3d   :  { %2029 = shalt.err (!%p2026_p12)
}
  0x3e   :  { %s2030_s2 = scalar_lea.vmem %s55_s20, 1536  ;;  %p2035_p0 = scmp.lt.s32.totalorder %s55_s20, %s55_s20 }
  0x3f   :  { %p2031_p13 = scmp.ne.s32.totalorder %s55_s20, %s2030_s2  ;;  %p2036_p1 = scmp.lt.s32.totalorder %s2030_s2, %s2030_s2 }
  0x41   :  { %p2037_p2 = por %p2036_p1, %p2035_p0 }
  0x43   :  { %p2038_p3 = pnand %p2037_p2, %p2031_p13 }
  0x45   :  { %2041 = shalt.err (!%p2038_p3)
}
  0x46   :  { %60 = dma.hbm_to_vmem [thread:$0]  %s2478_s4, 1536, %s55_s20, [#allocation6], %s2123_s18, %s2123_s18, %s2124_s24  }
  0x47   :  { %s2042_s16 = scalar_lea.hbm %s2480_s6, 192 }
  0x48   :  { %p2043_p4 = scmp.ne.s32.totalorder %s2480_s6, %s2042_s16  ;;  %p2046_p5 = scmp.lt.u32.totalorder %s2042_s16, %s2480_s6 }
  0x4a   :  { %p2048_p6 = pnand %p2046_p5, %p2043_p4 }
  0x4c   :  { %2051 = shalt.err (!%p2048_p6)
}
  0x4d   :  { %s2052_s21 = scalar_lea.vmem %s79_s22, 192  ;;  %p2057_p8 = scmp.lt.s32.totalorder %s79_s22, %s79_s22 }
  0x4e   :  { %p2053_p7 = scmp.ne.s32.totalorder %s79_s22, %s2052_s21  ;;  %p2058_p9 = scmp.lt.s32.totalorder %s2052_s21, %s2052_s21 }
  0x50   :  { %p2059_p10 = por %p2058_p9, %p2057_p8 }
  0x52   :  { %p2060_p11 = pnand %p2059_p10, %p2053_p7 }
  0x54   :  { %2063 = shalt.err (!%p2060_p11)
}
  0x55   :  { %84 = dma.hbm_to_vmem [thread:$0]  %s2480_s6, 192, %s79_s22, [#allocation9], %s2123_s18, %s2123_s18, %s2124_s24  }
  0x56   :  { %s2127_s23 = smov [#allocation11]   ;;  %s2064_s27 = scalar_lea.hbm %s2482_s8, 512 }
  0x57   :  { %s92_s3 = sshll.u32 %s2127_s23, 4  ;;  %p2065_p12 = scmp.ne.s32.totalorder %s2482_s8, %s2064_s27  ;;  %s93_s3 = int_to_ptr.vmem [resolvable:$true] %s92_s3 }
  0x58   :  { %p2068_p13 = scmp.lt.u32.totalorder %s2064_s27, %s2482_s8 }
  0x5a   :  { %p2070_p0 = pnand %p2068_p13, %p2065_p12 }
  0x5c   :  { %2073 = shalt.err (!%p2070_p0)
}
  0x5d   :  { %s2074_s30 = scalar_lea.vmem %s93_s3, 512  ;;  %p2079_p2 = scmp.lt.s32.totalorder %s93_s3, %s93_s3 }
  0x5e   :  { %p2075_p1 = scmp.ne.s32.totalorder %s93_s3, %s2074_s30  ;;  %p2080_p3 = scmp.lt.s32.totalorder %s2074_s30, %s2074_s30 }
  0x60   :  { %p2081_p4 = por %p2080_p3, %p2079_p2 }
  0x62   :  { %p2082_p5 = pnand %p2081_p4, %p2075_p1 }
  0x64   :  { %2085 = shalt.err (!%p2082_p5)
}
  0x65   :  { %98 = dma.hbm_to_vmem [thread:$0]  %s2482_s8, 512, %s93_s3, [#allocation12], %s2123_s18, %s2123_s18, %s2124_s24  }
  0x66   :  { %2108 = dma.done.wait [#allocation3], 256  }
  0x67   :  { %2109 = vsyncadd [#allocation3], 4294967040 }
  0x68   :  { %2110 = dma.done.wait [#allocation6], 4608  }
  0x69   :  { %2111 = vsyncadd [#allocation6], 4294962688 }
  0x6a   :  { %2112 = dma.done.wait [#allocation9], 1728  }
  0x6b   :  { %2113 = vsyncadd [#allocation9], 4294965568 }
  0x6c   :  { %2114 = dma.done.wait [#allocation12], 512  }
  0x6d   :  { %2115 = vsyncadd [#allocation12], 4294966784  ;;  %v2282_v0 = vld [vmem:[%s2474_s0] sm:$0xff]  ;;  %v2287_v1 = vld [vmem:[%s2474_s0 + $0x8] sm:$0xff]  ;;  %vm165_vm0 = vcmask 261120   ;;  %vm269_vm1 = vcmask 523264   ;;  %v325_v53 = vlaneseq }
  0x6e   :  { %v2292_v2 = vld [vmem:[%s2474_s0 + $0x10] sm:$0xff]  ;;  %v127_v3 = vpack.c.bf16 %v2287_v1, %v2282_v0  ;;  %v2299_v4 = vld [vmem:[%s2474_s0 + $0x18] sm:$0xff]  ;;  %v2306_v6 = vld [vmem:[%s2475_s1] sm:$0xff]   ;;  %s2131_s17 = smov [#allocation13]  }
  0x6f   :  { %v128_v5 = vpack.c.bf16 %v2299_v4, %v2292_v2  ;;  %1729 = vmatprep.mubr.msk.bf16.mxu0 %vm165_vm0, %v2306_v6  ;;  %v2313_v7 = vld [vmem:[%s2475_s1 + $0x8] sm:$0xff]   ;;  %v2318_v8 = vld [vmem:[%s2475_s1 + $0x10] sm:$0xff]   ;;  %v2327_v9 = vld [vmem:[%s2475_s1 + $0x18] sm:$0xff]   ;;  %v326_v54 = vshrl.u32 %v325_v53, 7  ;;  %s1551_s5 = sshll.u32 %s2131_s17, 4  ;;  %s1552_s5 = int_to_ptr.vmem [resolvable:$true] %s1551_s5 }
  0x70   :  { %1725 = vmatprep.subr.bf16.mxu0 %v127_v3  ;;  %v2331_v10 = vld [vmem:[#allocation2] sm:$0xff]   ;;  %v1922_v11 = vld [vmem:[#allocation7] sm:$0xff]   ;;  %v1923_v12 = vld [vmem:[#allocation7 + $0x8] sm:$0xff]   ;;  %s2086_s8 = scalar_lea.vmem %s1552_s5, 16  ;;  %s2090_s18 = scalar_lea.vmem %s1552_s5, 32 }
  0x71   :  { %1726 = vmatpush3.bf16.msra.mxu0 %v127_v3  ;;  %1745 = vmatprep.mubr.msk.bf16.mxu1 %vm269_vm1, %v2331_v10  ;;  %v131_v13 = vld [vmem:[#allocation5 + $0x10] sm:$0xff]  ;;  %v129_v14 = vld [vmem:[#allocation5] sm:$0xff]  ;;  %v132_v16 = vld [vmem:[#allocation5 + $0x18] sm:$0xff]  ;;  %v2339_v55 = vsub.s32 3, %v326_v54  ;;  %p2087_p6 = scmp.ne.s32.totalorder %s1552_s5, %s2086_s8  ;;  %p2091_p7 = scmp.lt.s32.totalorder %s1552_s5, %s1552_s5 }
  0x72   :  { %1727 = vmatprep.subr.bf16.mxu0 %v128_v5  ;;  %v130_v19 = vld [vmem:[#allocation5 + $0x8] sm:$0xff]  ;;  %v135_v29 = vld [vmem:[#allocation5 + $0x30] sm:$0xff]  ;;  %v133_v31 = vld [vmem:[#allocation5 + $0x20] sm:$0xff]  ;;  %p2092_p8 = scmp.lt.s32.totalorder %s2090_s18, %s2086_s8 }
  0x73   :  { %v136_v33 = vld [vmem:[#allocation5 + $0x38] sm:$0xff]  ;;  %v134_v37 = vld [vmem:[#allocation5 + $0x28] sm:$0xff]  ;;  %v1924_v50 = vld [vmem:[#allocation7 + $0x10] sm:$0xff]  }
  0x74   :  { %v2335_v49 = vld [vmem:[#allocation2 + $0x8] sm:$0xff]   ;;  %v1926_v52 = vld [vmem:[#allocation8] sm:$0xff]   ;;  %p2093_p9 = por %p2092_p8, %p2091_p7 }
  0x75   :  { %1728 = vmatpush3.bf16.msra.mxu0 %v128_v5  ;;  %v1925_v51 = vld [vmem:[#allocation7 + $0x18] sm:$0xff]   ;;  %v126_v56 = vld [vmem:[#allocation10] sm:$0xf] }
  0x76   :  { %1749 = vmatprep.subr.bf16.mxu0 %v1922_v11  ;;  %v328_v57 = vrot.slane %v126_v56, %v2339_v55  ;;  %p2094_p10 = pnand %p2093_p9, %p2087_p6 }
  0x78   :  { %1730 = vmatmul.mubr.msk.bf16.vlgmr.msra.gmra.mrb[0].mxu0 %vm165_vm0, %v2313_v7  ;;  %v331_v58 = vmul.f32 %v328_v57, %v2292_v2  ;;  %v332_v59 = vmul.f32 %v328_v57, %v2299_v4  ;;  %v329_v61 = vmul.f32 %v328_v57, %v2282_v0  ;;  %v330_v62 = vmul.f32 %v328_v57, %v2287_v1  ;;  %v1927_v2 = vld [vmem:[#allocation8 + $0x8] sm:$0xff]   ;;  %v1928_v0 = vld [vmem:[#allocation8 + $0x10] sm:$0xff]   ;;  %v1929_v1 = vld [vmem:[#allocation8 + $0x18] sm:$0xff]  }
  0x79   :  { %1733 = vmatprep.mubr.msk.bf16.mxu0 %vm165_vm0, %v2318_v8  ;;  %1750 = vmatpush3.bf16.msra.mxu0 %v1922_v11  ;;  %v2350_v4 = vsub.s32 1, %v326_v54 }
  0x7a   :  { %1751 = vmatprep.subr.bf16.mxu0 %v1923_v12 }
  0x7d   :  { %1752 = vmatpush3.bf16.msra.mxu0 %v1923_v12 }
  0x7e   :  { %1753 = vmatprep.subr.bf16.mxu0 %v1924_v50 }
  0x80   :  { %1734 = vmatmul.mubr.msk.bf16.gmra.mrb[4].mxu0 %vm165_vm0, %v2327_v9 }
  0x81   :  { %1754 = vmatpush3.bf16.msra.mxu0 %v1924_v50 }
  0x82   :  { %1755 = vmatprep.subr.bf16.mxu0 %v1925_v51 }
  0x85   :  { %1756 = vmatpush3.bf16.msra.mxu0 %v1925_v51 }
 0x14b   :  { %v1731_v15 = vpop.f32.mrb[0].mxu0 }
 0x14c   :  { %v221_v17 = vadd.f32 %v1731_v15, %v131_v13  ;;  %v212_v18 = vpop.f32.mrb[1].mxu0 }
 0x14d   :  { %v213_v20 = vadd.f32 %v212_v18, %v129_v14  ;;  %v1732_v21 = vpop.f32.mrb[2].mxu0 }
 0x14e   :  { %v224_v22 = vadd.f32 %v1732_v21, %v132_v16  ;;  %v215_v23 = vpop.f32.mrb[3].mxu0  ;;  %v245_v25 = vmax.f32 %v221_v17, 0.0  ;;  %v350_v17 = vrot.slane %v126_v56, %v2350_v4 }
 0x14f   :  { %v216_v24 = vadd.f32 %v215_v23, %v130_v19  ;;  %v243_v27 = vmax.f32 %v213_v20, 0.0 }
 0x150   :  { %v246_v26 = vmax.f32 %v224_v22, 0.0 }
 0x151   :  { %v244_v28 = vmax.f32 %v216_v24, 0.0 }
 0x152   :  { %v256_v30 = vpack.c.bf16 %v246_v26, %v245_v25 }
 0x153   :  { %v1735_v32 = vpop.f32.mrb[4].mxu0  ;;  %v255_v34 = vpack.c.bf16 %v244_v28, %v243_v27 }
 0x154   :  { %v237_v35 = vadd.f32 %v1735_v32, %v135_v29  ;;  %v228_v36 = vpop.f32.mrb[5].mxu0 }
 0x155   :  { %v229_v38 = vadd.f32 %v228_v36, %v133_v31  ;;  %v1736_v39 = vpop.f32.mrb[6].mxu0  ;;  %1737 = vmatprep.subr.bf16.mxu1 %v255_v34  ;;  %v2355_v36 = vsub.s32 2, %v326_v54 }
 0x156   :  { %v240_v40 = vadd.f32 %v1736_v39, %v136_v33  ;;  %v231_v41 = vpop.f32.mrb[7].mxu0  ;;  %1738 = vmatpush3.bf16.msra.mxu1 %v255_v34  ;;  %v249_v43 = vmax.f32 %v237_v35, 0.0 }
 0x157   :  { %v232_v42 = vadd.f32 %v231_v41, %v134_v37  ;;  %1739 = vmatprep.subr.bf16.mxu1 %v256_v30  ;;  %v247_v45 = vmax.f32 %v229_v38, 0.0  ;;  %v455_v37 = vrot.slane %v126_v56, %v2355_v36 }
 0x158   :  { %v250_v44 = vmax.f32 %v240_v40, 0.0 }
 0x159   :  { %v248_v46 = vmax.f32 %v232_v42, 0.0 }
 0x15a   :  { %v258_v47 = vpack.c.bf16 %v250_v44, %v249_v43  ;;  %1740 = vmatpush3.bf16.msra.mxu1 %v256_v30 }
 0x15b   :  { %v257_v48 = vpack.c.bf16 %v248_v46, %v247_v45 }
 0x15d   :  { %1741 = vmatprep.subr.bf16.mxu1 %v257_v48 }
 0x15e   :  { %1742 = vmatpush3.bf16.msra.mxu1 %v257_v48 }
 0x15f   :  { %1743 = vmatprep.subr.bf16.mxu1 %v258_v47 }
 0x162   :  { %1744 = vmatpush3.bf16.msra.mxu1 %v258_v47 }
 0x163   :  { %1761 = vmatprep.subr.bf16.mxu1 %v1926_v52 }
 0x165   :  { %1746 = vmatmul.mubr.msk.bf16.vlgmr.msra.gmra.mrb[0].mxu1 %vm269_vm1, %v2335_v49 }
 0x166   :  { %1762 = vmatpush3.bf16.msra.mxu1 %v1926_v52 }
 0x167   :  { %1763 = vmatprep.subr.bf16.mxu1 %v1927_v2 }
 0x16a   :  { %1764 = vmatpush3.bf16.msra.mxu1 %v1927_v2 }
 0x16b   :  { %1765 = vmatprep.subr.bf16.mxu1 %v1928_v0 }
 0x16e   :  { %1766 = vmatpush3.bf16.msra.mxu1 %v1928_v0 }
 0x16f   :  { %1767 = vmatprep.subr.bf16.mxu1 %v1929_v1 }
 0x172   :  { %1768 = vmatpush3.bf16.msra.mxu1 %v1929_v1 }
 0x238   :  { %v1747_v60 = vpop.f32.mrb[0].mxu1 }
 0x239   :  { %v310_v63 = vpop.f32.mrb[1].mxu1  ;;  %v335_v5 = vadd.f32 %v1747_v60, %v331_v58  ;;  %v1930_v58 = vld [vmem:[#allocation7 + $0x20] sm:$0xff]   ;;  %v554_v60 = vld [vmem:[#allocation5 + $0x50] sm:$0xff] }
 0x23a   :  { %v1748_v3 = vpop.f32.mrb[2].mxu1  ;;  %v333_v13 = vadd.f32 %v329_v61, %v310_v63  ;;  %1797 = vmatprep.subr.bf16.mxu1 %v1930_v58  ;;  %v552_v61 = vld [vmem:[#allocation5 + $0x40] sm:$0xff]  ;;  %v555_v63 = vld [vmem:[#allocation5 + $0x58] sm:$0xff] }
 0x23b   :  { %v336_v11 = vadd.f32 %v1748_v3, %v332_v59  ;;  %v313_v12 = vpop.f32.mrb[3].mxu1  ;;  %v1931_v59 = vld [vmem:[#allocation7 + $0x28] sm:$0xff]  }
 0x23c   :  { %v334_v14 = vadd.f32 %v330_v62, %v313_v12 }
 0x23d   :  { %v338_v15 = vpack.c.bf16 %v336_v11, %v335_v5  ;;  %v553_v11 = vld [vmem:[#allocation5 + $0x48] sm:$0xff] }
 0x23e   :  { %v337_v16 = vpack.c.bf16 %v334_v14, %v333_v13 }
 0x240   :  { %1757 = vmatprep.mubr.msk.bf16.mxu0 %vm269_vm1, %v337_v16 }
 0x241   :  { %1758 = vmatmul.mubr.msk.bf16.vlgmr.msra.gmra.mrb[8].mxu0 %vm269_vm1, %v338_v15 }
 0x242   :  { %1777 = vmatprep.mubr.msk.bf16.mxu0 %vm165_vm0, %v2306_v6 }
 0x314   :  { %v1759_v18 = vpop.f32.mrb[8].mxu0 }
 0x315   :  { %v424_v19 = vadd.f32 %v1759_v18, %v350_v17  ;;  %v415_v20 = vpop.f32.mrb[9].mxu0  ;;  %v558_v18 = vld [vmem:[#allocation5 + $0x70] sm:$0xff] }
 0x316   :  { %v416_v21 = vadd.f32 %v415_v20, %v350_v17  ;;  %v1760_v22 = vpop.f32.mrb[10].mxu0  ;;  %v556_v20 = vld [vmem:[#allocation5 + $0x60] sm:$0xff] }
 0x317   :  { %v436_v23 = vmul.f32 0.01, %v424_v19  ;;  %v427_v24 = vadd.f32 %v1760_v22, %v350_v17  ;;  %v418_v25 = vpop.f32.mrb[11].mxu0  ;;  %vm432_vm2 = vcmp.gt.f32.partialorder %v424_v19, 0.0 }
 0x318   :  { %v434_v26 = vmul.f32 0.01, %v416_v21  ;;  %v419_v27 = vadd.f32 %v418_v25, %v350_v17  ;;  %vm430_vm3 = vcmp.gt.f32.partialorder %v416_v21, 0.0 }
 0x319   :  { %vm433_vm4 = vcmp.gt.f32.partialorder %v427_v24, 0.0  ;;  %v437_v28 = vmul.f32 0.01, %v427_v24  ;;  %v440_v30 = vsel %vm432_vm2, %v424_v19, %v436_v23  ;;  %v559_v23 = vld [vmem:[#allocation5 + $0x78] sm:$0xff] }
 0x31a   :  { %vm431_vm5 = vcmp.gt.f32.partialorder %v419_v27, 0.0  ;;  %v435_v29 = vmul.f32 0.01, %v419_v27  ;;  %v438_v32 = vsel %vm430_vm3, %v416_v21, %v434_v26  ;;  %v557_v26 = vld [vmem:[#allocation5 + $0x68] sm:$0xff] }
 0x31b   :  { %v441_v31 = vsel %vm433_vm4, %v427_v24, %v437_v28 }
 0x31c   :  { %v443_v33 = vpack.c.bf16 %v441_v31, %v440_v30  ;;  %v439_v34 = vsel %vm431_vm5, %v419_v27, %v435_v29 }
 0x31d   :  { %v442_v35 = vpack.c.bf16 %v439_v34, %v438_v32 }
 0x31f   :  { %1769 = vmatprep.mubr.msk.bf16.mxu1 %vm269_vm1, %v442_v35 }
 0x320   :  { %1770 = vmatmul.mubr.msk.bf16.vlgmr.msra.gmra.mrb[4].mxu1 %vm269_vm1, %v443_v33 }
 0x321   :  { %1798 = vmatpush3.bf16.msra.mxu1 %v1930_v58 }
 0x322   :  { %1799 = vmatprep.subr.bf16.mxu1 %v1931_v59 }
 0x325   :  { %1800 = vmatpush3.bf16.msra.mxu1 %v1931_v59 }
 0x3f3   :  { %v1771_v38 = vpop.f32.mrb[4].mxu1 }
 0x3f4   :  { %v529_v39 = vadd.f32 %v1771_v38, %v455_v37  ;;  %v520_v40 = vpop.f32.mrb[5].mxu1 }
 0x3f5   :  { %v521_v41 = vadd.f32 %v520_v40, %v455_v37  ;;  %v1772_v42 = vpop.f32.mrb[6].mxu1  ;;  %v1933_v40 = vld [vmem:[#allocation7 + $0x38] sm:$0xff]  }
 0x3f6   :  { %v541_v43 = vmul.f32 0.01, %v529_v39  ;;  %v532_v44 = vadd.f32 %v1772_v42, %v455_v37  ;;  %v523_v45 = vpop.f32.mrb[7].mxu1  ;;  %vm537_vm6 = vcmp.gt.f32.partialorder %v529_v39, 0.0  ;;  %v548_v42 = vld [vmem:[#allocation10 + $0x4] sm:$0xf] }
 0x3f7   :  { %v539_v46 = vmul.f32 0.01, %v521_v41  ;;  %v524_v47 = vadd.f32 %v523_v45, %v455_v37  ;;  %vm535_vm7 = vcmp.gt.f32.partialorder %v521_v41, 0.0 }
 0x3f8   :  { %vm538_vm8 = vcmp.gt.f32.partialorder %v532_v44, 0.0  ;;  %v542_v48 = vmul.f32 0.01, %v532_v44  ;;  %v2358_v51 = vsel %vm537_vm6, %v529_v39, %v541_v43  ;;  %v1932_v39 = vld [vmem:[#allocation7 + $0x30] sm:$0xff]   ;;  %v689_v43 = vrot.slane %v548_v42, %v2339_v55 }
 0x3f9   :  { %vm536_vm9 = vcmp.gt.f32.partialorder %v524_v47, 0.0  ;;  %v540_v50 = vmul.f32 0.01, %v524_v47  ;;  %v2362_v53 = vsel %vm535_vm7, %v521_v41, %v539_v46  ;;  %1801 = vmatprep.subr.bf16.mxu1 %v1932_v39  ;;  %v1934_v41 = vld [vmem:[#allocation8 + $0x20] sm:$0xff]  }
 0x3fa   :  { %v2360_v52 = vsel %vm538_vm8, %v532_v44, %v542_v48  ;;  %1802 = vmatpush3.bf16.msra.mxu1 %v1932_v39  ;;  %v692_v44 = vmul.f32 %v689_v43, %v2358_v51  ;;  %v690_v46 = vmul.f32 %v689_v43, %v2362_v53 }
 0x3fb   :  { %v2364_v54 = vsel %vm536_vm9, %v524_v47, %v540_v50  ;;  %v550_v56 = vpack.c.bf16 %v2360_v52, %v2358_v51  ;;  %1803 = vmatprep.subr.bf16.mxu1 %v1933_v40  ;;  %v693_v50 = vmul.f32 %v689_v43, %v2360_v52  ;;  %v1935_v51 = vld [vmem:[#allocation8 + $0x28] sm:$0xff]   ;;  %v1936_v52 = vld [vmem:[#allocation8 + $0x30] sm:$0xff]  }
 0x3fc   :  { %v549_v57 = vpack.c.bf16 %v2364_v54, %v2362_v53  ;;  %v691_v58 = vmul.f32 %v689_v43, %v2364_v54  ;;  %v1937_v53 = vld [vmem:[#allocation8 + $0x38] sm:$0xff]   ;;  %v712_v54 = vrot.slane %v548_v42, %v2350_v4  ;;  %v1938_v43 = vld [vmem:[#allocation7 + $0x40] sm:$0xff]  }
 0x3fe   :  { %1773 = vmatprep.subr.bf16.mxu0 %v549_v57  ;;  %1804 = vmatpush3.bf16.msra.mxu1 %v1933_v40 }
 0x3ff   :  { %1774 = vmatpush3.bf16.msra.mxu0 %v549_v57 }
 0x400   :  { %1775 = vmatprep.subr.bf16.mxu0 %v550_v56 }
 0x403   :  { %1776 = vmatpush3.bf16.msra.mxu0 %v550_v56 }
 0x406   :  { %1778 = vmatmul.mubr.msk.bf16.vlgmr.msra.gmra.mrb[12].mxu0 %vm165_vm0, %v2313_v7 }
 0x407   :  { %1781 = vmatprep.mubr.msk.bf16.mxu0 %vm165_vm0, %v2318_v8 }
 0x40e   :  { %1782 = vmatmul.mubr.msk.bf16.gmra.mrb[16].mxu0 %vm165_vm0, %v2327_v9 }
 0x40f   :  { %1793 = vmatprep.mubr.msk.bf16.mxu0 %vm269_vm1, %v2331_v10 }
 0x4d9   :  { %v1779_v62 = vpop.f32.mrb[12].mxu0 }
 0x4da   :  { %v603_v3 = vadd.f32 %v1779_v62, %v554_v60  ;;  %v594_v5 = vpop.f32.mrb[13].mxu0 }
 0x4db   :  { %v595_v12 = vadd.f32 %v594_v5, %v552_v61  ;;  %v1780_v13 = vpop.f32.mrb[14].mxu0 }
 0x4dc   :  { %v606_v14 = vadd.f32 %v1780_v13, %v555_v63  ;;  %v597_v15 = vpop.f32.mrb[15].mxu0  ;;  %v627_v2 = vmax.f32 %v603_v3, 0.0 }
 0x4dd   :  { %v598_v16 = vadd.f32 %v597_v15, %v553_v11  ;;  %v625_v1 = vmax.f32 %v595_v12, 0.0 }
 0x4de   :  { %v628_v0 = vmax.f32 %v606_v14, 0.0 }
 0x4df   :  { %v626_v17 = vmax.f32 %v598_v16, 0.0 }
 0x4e0   :  { %v634_v19 = vpack.c.bf16 %v628_v0, %v627_v2 }
 0x4e1   :  { %v633_v21 = vpack.c.bf16 %v626_v17, %v625_v1  ;;  %v1783_v22 = vpop.f32.mrb[16].mxu0 }
 0x4e2   :  { %v619_v24 = vadd.f32 %v1783_v22, %v558_v18  ;;  %v610_v25 = vpop.f32.mrb[17].mxu0 }
 0x4e3   :  { %v611_v27 = vadd.f32 %v610_v25, %v556_v20  ;;  %v1784_v28 = vpop.f32.mrb[18].mxu0  ;;  %1785 = vmatprep.subr.bf16.mxu0 %v633_v21 }
 0x4e4   :  { %v622_v29 = vadd.f32 %v1784_v28, %v559_v23  ;;  %v613_v30 = vpop.f32.mrb[19].mxu0  ;;  %1786 = vmatpush3.bf16.msra.mxu0 %v633_v21  ;;  %v631_v32 = vmax.f32 %v619_v24, 0.0  ;;  %v818_v23 = vrot.slane %v548_v42, %v2355_v36 }
 0x4e5   :  { %v614_v31 = vadd.f32 %v613_v30, %v557_v26  ;;  %1787 = vmatprep.subr.bf16.mxu0 %v634_v19  ;;  %v629_v34 = vmax.f32 %v611_v27, 0.0 }
 0x4e6   :  { %v632_v33 = vmax.f32 %v622_v29, 0.0 }
 0x4e7   :  { %v630_v35 = vmax.f32 %v614_v31, 0.0 }
 0x4e8   :  { %v636_v37 = vpack.c.bf16 %v632_v33, %v631_v32  ;;  %1788 = vmatpush3.bf16.msra.mxu0 %v634_v19 }
 0x4e9   :  { %v635_v38 = vpack.c.bf16 %v630_v35, %v629_v34 }
 0x4eb   :  { %1789 = vmatprep.subr.bf16.mxu0 %v635_v38 }
 0x4ec   :  { %1790 = vmatpush3.bf16.msra.mxu0 %v635_v38 }
 0x4ed   :  { %1791 = vmatprep.subr.bf16.mxu0 %v636_v37 }
 0x4f0   :  { %1792 = vmatpush3.bf16.msra.mxu0 %v636_v37 }
 0x4f1   :  { %1809 = vmatprep.subr.bf16.mxu0 %v1934_v41 }
 0x4f3   :  { %1794 = vmatmul.mubr.msk.bf16.vlgmr.msra.gmra.mrb[20].mxu0 %vm269_vm1, %v2335_v49 }
 0x4f4   :  { %1810 = vmatpush3.bf16.msra.mxu0 %v1934_v41 }
 0x4f5   :  { %1811 = vmatprep.subr.bf16.mxu0 %v1935_v51 }
 0x4f8   :  { %1812 = vmatpush3.bf16.msra.mxu0 %v1935_v51 }
 0x4f9   :  { %1813 = vmatprep.subr.bf16.mxu0 %v1936_v52 }
 0x4fc   :  { %1814 = vmatpush3.bf16.msra.mxu0 %v1936_v52  ;;  %v919_v52 = vld [vmem:[#allocation5 + $0xa0] sm:$0xff] }
 0x4fd   :  { %1815 = vmatprep.subr.bf16.mxu0 %v1937_v53 }
 0x500   :  { %1816 = vmatpush3.bf16.msra.mxu0 %v1937_v53 }
 0x501   :  { %1845 = vmatprep.subr.bf16.mxu0 %v1938_v43 }
 0x5c6   :  { %v1795_v45 = vpop.f32.mrb[20].mxu0 }
 0x5c7   :  { %v696_v47 = vadd.f32 %v1795_v45, %v692_v44  ;;  %v671_v48 = vpop.f32.mrb[21].mxu0  ;;  %v1939_v44 = vld [vmem:[#allocation7 + $0x48] sm:$0xff]   ;;  %v917_v45 = vld [vmem:[#allocation5 + $0x90] sm:$0xff] }
 0x5c8   :  { %v694_v56 = vadd.f32 %v690_v46, %v671_v48  ;;  %v1796_v57 = vpop.f32.mrb[22].mxu0  ;;  %v915_v46 = vld [vmem:[#allocation5 + $0x80] sm:$0xff]  ;;  %v918_v48 = vld [vmem:[#allocation5 + $0x98] sm:$0xff] }
 0x5c9   :  { %v697_v59 = vadd.f32 %v1796_v57, %v693_v50  ;;  %v674_v60 = vpop.f32.mrb[23].mxu0 }
 0x5ca   :  { %v695_v61 = vadd.f32 %v691_v58, %v674_v60 }
 0x5cb   :  { %v699_v62 = vpack.c.bf16 %v697_v59, %v696_v47 }
 0x5cc   :  { %v698_v63 = vpack.c.bf16 %v695_v61, %v694_v56  ;;  %v916_v56 = vld [vmem:[#allocation5 + $0x88] sm:$0xff] }
 0x5ce   :  { %1805 = vmatprep.mubr.msk.bf16.mxu1 %vm269_vm1, %v698_v63  ;;  %v921_v63 = vld [vmem:[#allocation5 + $0xb0] sm:$0xff] }
 0x5cf   :  { %1806 = vmatmul.mubr.msk.bf16.vlgmr.msra.gmra.mrb[8].mxu1 %vm269_vm1, %v699_v62 }
 0x5d0   :  { %1825 = vmatprep.mubr.msk.bf16.mxu1 %vm165_vm0, %v2306_v6 }
 0x6a2   :  { %v1807_v3 = vpop.f32.mrb[8].mxu1 }
 0x6a3   :  { %v786_v5 = vadd.f32 %v1807_v3, %v712_v54  ;;  %v777_v11 = vpop.f32.mrb[9].mxu1  ;;  %v922_v3 = vld [vmem:[#allocation5 + $0xb8] sm:$0xff] }
 0x6a4   :  { %v778_v12 = vadd.f32 %v777_v11, %v712_v54  ;;  %v1808_v13 = vpop.f32.mrb[10].mxu1 }
 0x6a5   :  { %v798_v14 = vmul.f32 0.01, %v786_v5  ;;  %v789_v15 = vadd.f32 %v1808_v13, %v712_v54  ;;  %v780_v16 = vpop.f32.mrb[11].mxu1  ;;  %vm794_vm10 = vcmp.gt.f32.partialorder %v786_v5, 0.0 }
 0x6a6   :  { %v796_v6 = vmul.f32 0.01, %v778_v12  ;;  %v781_v2 = vadd.f32 %v780_v16, %v712_v54  ;;  %vm792_vm11 = vcmp.gt.f32.partialorder %v778_v12, 0.0 }
 0x6a7   :  { %vm795_vm12 = vcmp.gt.f32.partialorder %v789_v15, 0.0  ;;  %v799_v0 = vmul.f32 0.01, %v789_v15  ;;  %v802_v17 = vsel %vm794_vm10, %v786_v5, %v798_v14 }
 0x6a8   :  { %vm793_vm13 = vcmp.gt.f32.partialorder %v781_v2, 0.0  ;;  %v797_v1 = vmul.f32 0.01, %v781_v2  ;;  %v800_v19 = vsel %vm792_vm11, %v778_v12, %v796_v6  ;;  %v920_v12 = vld [vmem:[#allocation5 + $0xa8] sm:$0xff] }
 0x6a9   :  { %v803_v18 = vsel %vm795_vm12, %v789_v15, %v799_v0 }
 0x6aa   :  { %v805_v20 = vpack.c.bf16 %v803_v18, %v802_v17  ;;  %v801_v21 = vsel %vm793_vm13, %v781_v2, %v797_v1 }
 0x6ab   :  { %v804_v22 = vpack.c.bf16 %v801_v21, %v800_v19  ;;  %v1941_v21 = vld [vmem:[#allocation7 + $0x58] sm:$0xff]  }
 0x6ad   :  { %1817 = vmatprep.mubr.msk.bf16.mxu0 %vm269_vm1, %v804_v22  ;;  %v1942_v22 = vld [vmem:[#allocation8 + $0x40] sm:$0xff]  }
 0x6ae   :  { %1818 = vmatmul.mubr.msk.bf16.vlgmr.msra.gmra.mrb[24].mxu0 %vm269_vm1, %v805_v20  ;;  %v1940_v20 = vld [vmem:[#allocation7 + $0x50] sm:$0xff]  }
 0x6af   :  { %1846 = vmatpush3.bf16.msra.mxu0 %v1938_v43 }
 0x6b0   :  { %1847 = vmatprep.subr.bf16.mxu0 %v1939_v44 }
 0x6b3   :  { %1848 = vmatpush3.bf16.msra.mxu0 %v1939_v44 }
 0x6b4   :  { %1849 = vmatprep.subr.bf16.mxu0 %v1940_v20 }
 0x6b7   :  { %1850 = vmatpush3.bf16.msra.mxu0 %v1940_v20 }
 0x6b8   :  { %1851 = vmatprep.subr.bf16.mxu0 %v1941_v21 }
 0x6bb   :  { %1852 = vmatpush3.bf16.msra.mxu0 %v1941_v21  ;;  %v1951_v21 = vld [vmem:[#allocation11 + $0x8] sm:$0xff]  }
 0x781   :  { %v1819_v24 = vpop.f32.mrb[24].mxu0 }
 0x782   :  { %v892_v25 = vadd.f32 %v1819_v24, %v818_v23  ;;  %v883_v26 = vpop.f32.mrb[25].mxu0 }
 0x783   :  { %v884_v27 = vadd.f32 %v883_v26, %v818_v23  ;;  %v1820_v28 = vpop.f32.mrb[26].mxu0 }
 0x784   :  { %v904_v29 = vmul.f32 0.01, %v892_v25  ;;  %v895_v30 = vadd.f32 %v1820_v28, %v818_v23  ;;  %v886_v31 = vpop.f32.mrb[27].mxu0  ;;  %vm900_vm14 = vcmp.gt.f32.partialorder %v892_v25, 0.0 }
 0x785   :  { %v902_v32 = vmul.f32 0.01, %v884_v27  ;;  %v887_v33 = vadd.f32 %v886_v31, %v818_v23  ;;  %vm898_vm15 = vcmp.gt.f32.partialorder %v884_v27, 0.0  ;;  %v2415_v23 = vld [vmem:[#allocation10 + $0x8] sm:$0xf] }
 0x786   :  { %vm901_vm2 = vcmp.gt.f32.partialorder %v895_v30, 0.0  ;;  %v905_v34 = vmul.f32 0.01, %v895_v30  ;;  %v2393_v37 = vsel %vm900_vm14, %v892_v25, %v904_v29  ;;  %v1052_v24 = vrot.slane %v2415_v23, %v2339_v55  ;;  %v1943_v55 = vld [vmem:[#allocation8 + $0x48] sm:$0xff]  }
 0x787   :  { %vm899_vm3 = vcmp.gt.f32.partialorder %v887_v33, 0.0  ;;  %v903_v35 = vmul.f32 0.01, %v887_v33  ;;  %v2397_v39 = vsel %vm898_vm15, %v884_v27, %v902_v32  ;;  %vm2129_vm15 = vmmov 0  }
 0x788   :  { %v2395_v38 = vsel %vm901_vm2, %v895_v30, %v905_v34  ;;  %v1055_v25 = vmul.f32 %v1052_v24, %v2393_v37  ;;  %v1053_v27 = vmul.f32 %v1052_v24, %v2397_v39 }
 0x789   :  { %v2399_v40 = vsel %vm899_vm3, %v887_v33, %v903_v35  ;;  %v913_v41 = vpack.c.bf16 %v2395_v38, %v2393_v37  ;;  %v1056_v29 = vmul.f32 %v1052_v24, %v2395_v38  ;;  %v1944_v37 = vld [vmem:[#allocation8 + $0x50] sm:$0xff]   ;;  %v1945_v38 = vld [vmem:[#allocation8 + $0x58] sm:$0xff]  }
 0x78a   :  { %v912_v42 = vpack.c.bf16 %v2399_v40, %v2397_v39  ;;  %v1054_v32 = vmul.f32 %v1052_v24, %v2399_v40  ;;  %v1946_v39 = vld [vmem:[%s2481_s7] sm:$0xff]   ;;  %v1075_v40 = vrot.slane %v2415_v23, %v2350_v4 }
 0x78b   :  { %1869 = vmatprep.subr.bf16.mxu0 %v1946_v39  ;;  %v1623_v24 = vld [vmem:[%s2484_s10] ss:$0 sm:$0xff] }
 0x78c   :  { %1821 = vmatprep.subr.bf16.mxu1 %v912_v42 }
 0x78d   :  { %1822 = vmatpush3.bf16.msra.mxu1 %v912_v42 }
 0x78e   :  { %1823 = vmatprep.subr.bf16.mxu1 %v913_v41 }
 0x791   :  { %1824 = vmatpush3.bf16.msra.mxu1 %v913_v41 }
 0x794   :  { %1826 = vmatmul.mubr.msk.bf16.vlgmr.msra.gmra.mrb[12].mxu1 %vm165_vm0, %v2313_v7 }
 0x795   :  { %1829 = vmatprep.mubr.msk.bf16.mxu1 %vm165_vm0, %v2318_v8 }
 0x79c   :  { %1830 = vmatmul.mubr.msk.bf16.gmra.mrb[16].mxu1 %vm165_vm0, %v2327_v9 }
 0x79d   :  { %1841 = vmatprep.mubr.msk.bf16.mxu1 %vm269_vm1, %v2331_v10 }
 0x867   :  { %v1827_v47 = vpop.f32.mrb[12].mxu1 }
 0x868   :  { %v966_v7 = vadd.f32 %v1827_v47, %v917_v45  ;;  %v957_v50 = vpop.f32.mrb[13].mxu1 }
 0x869   :  { %v958_v8 = vadd.f32 %v957_v50, %v915_v46  ;;  %v1828_v57 = vpop.f32.mrb[14].mxu1 }
 0x86a   :  { %v969_v58 = vadd.f32 %v1828_v57, %v918_v48  ;;  %v960_v9 = vpop.f32.mrb[15].mxu1  ;;  %v990_v60 = vmax.f32 %v966_v7, 0.0 }
 0x86b   :  { %v961_v59 = vadd.f32 %v960_v9, %v916_v56  ;;  %v988_v61 = vmax.f32 %v958_v8, 0.0 }
 0x86c   :  { %v991_v10 = vmax.f32 %v969_v58, 0.0 }
 0x86d   :  { %v989_v62 = vmax.f32 %v961_v59, 0.0 }
 0x86e   :  { %v997_v51 = vpack.c.bf16 %v991_v10, %v990_v60 }
 0x86f   :  { %v996_v53 = vpack.c.bf16 %v989_v62, %v988_v61  ;;  %v1831_v54 = vpop.f32.mrb[16].mxu1  ;;  %v1947_v62 = vld [vmem:[%s2481_s7 + $0x8] sm:$0xff]  }
 0x870   :  { %v982_v5 = vadd.f32 %v1831_v54, %v921_v63  ;;  %v973_v11 = vpop.f32.mrb[17].mxu1  ;;  %v1948_v63 = vld [vmem:[%s2481_s7 + $0x10] sm:$0xff]  }
 0x871   :  { %v974_v13 = vadd.f32 %v973_v11, %v919_v52  ;;  %v1832_v14 = vpop.f32.mrb[18].mxu1  ;;  %1833 = vmatprep.subr.bf16.mxu1 %v996_v53  ;;  %v1950_v52 = vld [vmem:[#allocation11] sm:$0xff]  }
 0x872   :  { %v985_v15 = vadd.f32 %v1832_v14, %v922_v3  ;;  %v976_v16 = vpop.f32.mrb[19].mxu1  ;;  %1834 = vmatpush3.bf16.msra.mxu1 %v996_v53  ;;  %v994_v2 = vmax.f32 %v982_v5, 0.0  ;;  %v1181_v53 = vrot.slane %v2415_v23, %v2355_v36  ;;  %v1953_v23 = vld [vmem:[#allocation11 + $0x18] sm:$0xff]  }
 0x873   :  { %v977_v6 = vadd.f32 %v976_v16, %v920_v12  ;;  %1835 = vmatprep.subr.bf16.mxu1 %v997_v51  ;;  %v992_v1 = vmax.f32 %v974_v13, 0.0 }
 0x874   :  { %v995_v0 = vmax.f32 %v985_v15, 0.0 }
 0x875   :  { %v993_v17 = vmax.f32 %v977_v6, 0.0 }
 0x876   :  { %v999_v18 = vpack.c.bf16 %v995_v0, %v994_v2  ;;  %1836 = vmatpush3.bf16.msra.mxu1 %v997_v51  ;;  %v1949_v51 = vld [vmem:[%s2481_s7 + $0x18] sm:$0xff]  }
 0x877   :  { %v998_v19 = vpack.c.bf16 %v993_v17, %v992_v1 }
 0x879   :  { %1837 = vmatprep.subr.bf16.mxu1 %v998_v19 }
 0x87a   :  { %1838 = vmatpush3.bf16.msra.mxu1 %v998_v19 }
 0x87b   :  { %1839 = vmatprep.subr.bf16.mxu1 %v999_v18 }
 0x87e   :  { %1840 = vmatpush3.bf16.msra.mxu1 %v999_v18 }
 0x87f   :  { %1857 = vmatprep.subr.bf16.mxu1 %v1942_v22 }
 0x881   :  { %1842 = vmatmul.mubr.msk.bf16.vlgmr.msra.gmra.mrb[20].mxu1 %vm269_vm1, %v2335_v49 }
 0x882   :  { %1858 = vmatpush3.bf16.msra.mxu1 %v1942_v22  ;;  %v1952_v22 = vld [vmem:[#allocation11 + $0x10] sm:$0xff]  }
 0x883   :  { %1859 = vmatprep.subr.bf16.mxu1 %v1943_v55 }
 0x886   :  { %1860 = vmatpush3.bf16.msra.mxu1 %v1943_v55 }
 0x887   :  { %1861 = vmatprep.subr.bf16.mxu1 %v1944_v37 }
 0x88a   :  { %1862 = vmatpush3.bf16.msra.mxu1 %v1944_v37 }
 0x88b   :  { %1863 = vmatprep.subr.bf16.mxu1 %v1945_v38 }
 0x88e   :  { %1864 = vmatpush3.bf16.msra.mxu1 %v1945_v38 }
 0x88f   :  { %1881 = vmatprep.subr.bf16.mxu1 %v1950_v52 }
 0x954   :  { %v1843_v26 = vpop.f32.mrb[20].mxu1 }
 0x955   :  { %v1059_v49 = vadd.f32 %v1843_v26, %v1055_v25  ;;  %v1034_v28 = vpop.f32.mrb[21].mxu1 }
 0x956   :  { %v1057_v30 = vadd.f32 %v1053_v27, %v1034_v28  ;;  %v1844_v31 = vpop.f32.mrb[22].mxu1 }
 0x957   :  { %v1060_v33 = vadd.f32 %v1844_v31, %v1056_v29  ;;  %v1037_v34 = vpop.f32.mrb[23].mxu1 }
 0x958   :  { %v1058_v35 = vadd.f32 %v1054_v32, %v1037_v34 }
 0x959   :  { %v1062_v41 = vpack.c.bf16 %v1060_v33, %v1059_v49 }
 0x95a   :  { %v1061_v42 = vpack.c.bf16 %v1058_v35, %v1057_v30 }
 0x95c   :  { %1853 = vmatprep.mubr.msk.bf16.mxu0 %vm269_vm1, %v1061_v42 }
 0x95d   :  { %1854 = vmatmul.mubr.msk.bf16.vlgmr.msra.gmra.mrb[28].mxu0 %vm269_vm1, %v1062_v41 }
 0x95e   :  { %1870 = vmatpush3.bf16.msra.mxu0 %v1946_v39 }
 0x95f   :  { %1871 = vmatprep.subr.bf16.mxu0 %v1947_v62 }
 0x962   :  { %1872 = vmatpush3.bf16.msra.mxu0 %v1947_v62 }
 0x963   :  { %1873 = vmatprep.subr.bf16.mxu0 %v1948_v63 }
 0x966   :  { %1874 = vmatpush3.bf16.msra.mxu0 %v1948_v63 }
 0x967   :  { %1875 = vmatprep.subr.bf16.mxu0 %v1949_v51 }
 0x96a   :  { %1876 = vmatpush3.bf16.msra.mxu0 %v1949_v51 }
 0xa30   :  { %v1855_v43 = vpop.f32.mrb[28].mxu0 }
 0xa31   :  { %v1149_v44 = vadd.f32 %v1855_v43, %v1075_v40  ;;  %v1140_v45 = vpop.f32.mrb[29].mxu0  ;;  %v1488_v43 = vld [vmem:[%s2484_s10 + $0x2] sm:$0x1] }
 0xa32   :  { %v1141_v46 = vadd.f32 %v1140_v45, %v1075_v40  ;;  %v1856_v47 = vpop.f32.mrb[30].mxu0  ;;  %v1630_v45 = vld [vmem:[%s2484_s10 + $0x1] ss:$0 sm:$0xff] }
 0xa33   :  { %v1161_v48 = vmul.f32 0.01, %v1149_v44  ;;  %v1152_v7 = vadd.f32 %v1856_v47, %v1075_v40  ;;  %v1143_v50 = vpop.f32.mrb[31].mxu0  ;;  %vm1157_vm0 = vcmp.gt.f32.partialorder %v1149_v44, 0.0 }
 0xa34   :  { %v1159_v56 = vmul.f32 0.01, %v1141_v46  ;;  %v1144_v8 = vadd.f32 %v1143_v50, %v1075_v40  ;;  %vm1155_vm4 = vcmp.gt.f32.partialorder %v1141_v46, 0.0  ;;  %v2128_v40 = vmov 0.0  }
 0xa35   :  { %vm1158_vm5 = vcmp.gt.f32.partialorder %v1152_v7, 0.0  ;;  %v1162_v57 = vmul.f32 0.01, %v1152_v7  ;;  %v1165_v9 = vsel %vm1157_vm0, %v1149_v44, %v1161_v48  ;;  %1893 = vmatprep.subr.bf16.mxu0 %v2128_v40  ;;  %v2130_v44 = vmov 0  }
 0xa36   :  { %vm1156_vm6 = vcmp.gt.f32.partialorder %v1144_v8, 0.0  ;;  %v1160_v58 = vmul.f32 0.01, %v1144_v8  ;;  %v1163_v60 = vsel %vm1155_vm4, %v1141_v46, %v1159_v56  ;;  %1915 = vset.pattern.permute.xlu0 %v2130_v44 }
 0xa37   :  { %v1166_v59 = vsel %vm1158_vm5, %v1152_v7, %v1162_v57  ;;  %1491 = vperm.xlu0 %1915, %v1488_v43   ;;  %vm1543_vm5 = vcmask 253952  }
 0xa38   :  { %v1168_v4 = vpack.c.bf16 %v1166_v59, %v1165_v9  ;;  %v1164_v10 = vsel %vm1156_vm6, %v1144_v8, %v1160_v58 }
 0xa39   :  { %v1167_v61 = vpack.c.bf16 %v1164_v10, %v1163_v60 }
 0xa3b   :  { %1865 = vmatprep.mubr.msk.bf16.mxu1 %vm269_vm1, %v1167_v61 }
 0xa3c   :  { %1866 = vmatmul.mubr.msk.bf16.vlgmr.msra.gmra.mrb[24].mxu1 %vm269_vm1, %v1168_v4 }
 0xa3d   :  { %1882 = vmatpush3.bf16.msra.mxu1 %v1950_v52 }
 0xa3e   :  { %1883 = vmatprep.subr.bf16.mxu1 %v1951_v21 }
 0xa41   :  { %1884 = vmatpush3.bf16.msra.mxu1 %v1951_v21 }
 0xa42   :  { %1885 = vmatprep.subr.bf16.mxu1 %v1952_v22 }
 0xa45   :  { %1886 = vmatpush3.bf16.msra.mxu1 %v1952_v22 }
 0xa46   :  { %1887 = vmatprep.subr.bf16.mxu1 %v1953_v23 }
 0xa49   :  { %1888 = vmatpush3.bf16.msra.mxu1 %v1953_v23 }
 0xb0f   :  { %v1867_v54 = vpop.f32.mrb[24].mxu1 }
 0xb10   :  { %v1255_v3 = vadd.f32 %v1867_v54, %v1181_v53  ;;  %v1246_v5 = vpop.f32.mrb[25].mxu1  ;;  %v1485_v54 = vld [vmem:[%s2483_s9] sm:$0x1] }
 0xb11   :  { %v1247_v11 = vadd.f32 %v1246_v5, %v1181_v53  ;;  %v1868_v12 = vpop.f32.mrb[26].mxu1 }
 0xb12   :  { %v1267_v13 = vmul.f32 0.01, %v1255_v3  ;;  %v1258_v14 = vadd.f32 %v1868_v12, %v1181_v53  ;;  %v1249_v15 = vpop.f32.mrb[27].mxu1  ;;  %vm1263_vm7 = vcmp.gt.f32.partialorder %v1255_v3, 0.0 }
 0xb13   :  { %v1265_v16 = vmul.f32 0.01, %v1247_v11  ;;  %v1250_v6 = vadd.f32 %v1249_v15, %v1181_v53  ;;  %vm1261_vm8 = vcmp.gt.f32.partialorder %v1247_v11, 0.0 }
 0xb14   :  { %vm1264_vm9 = vcmp.gt.f32.partialorder %v1258_v14, 0.0  ;;  %v1268_v2 = vmul.f32 0.01, %v1258_v14  ;;  %v1271_v1 = vsel %vm1263_vm7, %v1255_v3, %v1267_v13  ;;  %v1492_v3 = vpop.permute.xlu0 %1491 }
 0xb15   :  { %vm1262_vm10 = vcmp.gt.f32.partialorder %v1250_v6, 0.0  ;;  %v1266_v0 = vmul.f32 0.01, %v1250_v6  ;;  %v1269_v18 = vsel %vm1261_vm8, %v1247_v11, %v1265_v16 }
 0xb16   :  { %v1272_v17 = vsel %vm1264_vm9, %v1258_v14, %v1268_v2 }
 0xb17   :  { %v1274_v36 = vpack.c.bf16 %v1272_v17, %v1271_v1  ;;  %v1270_v19 = vsel %vm1262_vm10, %v1250_v6, %v1266_v0 }
 0xb18   :  { %v1273_v20 = vpack.c.bf16 %v1270_v19, %v1269_v18 }
 0xb1a   :  { %1877 = vmatprep.mubr.msk.bf16.mxu0 %vm269_vm1, %v1273_v20 }
 0xb1b   :  { %1878 = vmatmul.mubr.msk.bf16.vlgmr.msra.gmra.mrb[32].mxu0 %vm269_vm1, %v1274_v36 }
 0xb1c   :  { %1897 = vmatprep.mubr.msk.bf16.mxu0 %vm2129_vm15, %v2128_v40 }
 0xbee   :  { %v1879_v25 = vpop.f32.mrb[32].mxu0 }
 0xbef   :  { %v1361_v26 = vadd.f32 %v1879_v25, %v1623_v24  ;;  %v1352_v27 = vpop.f32.mrb[33].mxu0 }
 0xbf0   :  { %v1353_v49 = vadd.f32 %v1623_v24, %v1352_v27  ;;  %v1880_v28 = vpop.f32.mrb[34].mxu0 }
 0xbf1   :  { %v1373_v29 = vmul.f32 0.01, %v1361_v26  ;;  %v1364_v30 = vadd.f32 %v1880_v28, %v1623_v24  ;;  %v1355_v31 = vpop.f32.mrb[35].mxu0  ;;  %vm1369_vm11 = vcmp.gt.f32.partialorder %v1361_v26, 0.0 }
 0xbf2   :  { %v1371_v32 = vmul.f32 0.01, %v1353_v49  ;;  %v1356_v33 = vadd.f32 %v1623_v24, %v1355_v31  ;;  %vm1367_vm12 = vcmp.gt.f32.partialorder %v1353_v49, 0.0 }
 0xbf3   :  { %vm1370_vm13 = vcmp.gt.f32.partialorder %v1364_v30, 0.0  ;;  %v1374_v34 = vmul.f32 0.01, %v1364_v30  ;;  %v1377_v41 = vsel %vm1369_vm11, %v1361_v26, %v1373_v29 }
 0xbf4   :  { %vm1368_vm14 = vcmp.gt.f32.partialorder %v1356_v33, 0.0  ;;  %v1372_v35 = vmul.f32 0.01, %v1356_v33  ;;  %v1375_v55 = vsel %vm1367_vm12, %v1353_v49, %v1371_v32 }
 0xbf5   :  { %v1378_v42 = vsel %vm1370_vm13, %v1364_v30, %v1374_v34 }
 0xbf6   :  { %v1380_v37 = vpack.c.bf16 %v1378_v42, %v1377_v41  ;;  %v1376_v38 = vsel %vm1368_vm14, %v1356_v33, %v1372_v35 }
 0xbf7   :  { %v1379_v39 = vpack.c.bf16 %v1376_v38, %v1375_v55 }
 0xbf9   :  { %1889 = vmatprep.mubr.msk.bf16.mxu1 %vm269_vm1, %v1379_v39 }
 0xbfa   :  { %1890 = vmatmul.mubr.msk.bf16.vlgmr.msra.gmra.mrb[28].mxu1 %vm269_vm1, %v1380_v37 }
 0xccd   :  { %v1891_v46 = vpop.f32.mrb[28].mxu1 }
 0xcce   :  { %v1467_v47 = vadd.f32 %v1891_v46, %v1630_v45  ;;  %v1458_v48 = vpop.f32.mrb[29].mxu1 }
 0xccf   :  { %v1459_v7 = vadd.f32 %v1630_v45, %v1458_v48  ;;  %v1892_v50 = vpop.f32.mrb[30].mxu1 }
 0xcd0   :  { %v1479_v56 = vmul.f32 0.01, %v1467_v47  ;;  %v1470_v8 = vadd.f32 %v1892_v50, %v1630_v45  ;;  %v1461_v57 = vpop.f32.mrb[31].mxu1  ;;  %vm1475_vm2 = vcmp.gt.f32.partialorder %v1467_v47, 0.0 }
 0xcd1   :  { %v1477_v58 = vmul.f32 0.01, %v1459_v7  ;;  %v1462_v9 = vadd.f32 %v1630_v45, %v1461_v57  ;;  %vm1473_vm3 = vcmp.gt.f32.partialorder %v1459_v7, 0.0 }
 0xcd2   :  { %vm1476_vm0 = vcmp.gt.f32.partialorder %v1470_v8, 0.0  ;;  %v1480_v59 = vmul.f32 0.01, %v1470_v8  ;;  %v1483_v4 = vsel %vm1475_vm2, %v1467_v47, %v1479_v56 }
 0xcd3   :  { %vm1474_vm4 = vcmp.gt.f32.partialorder %v1462_v9, 0.0  ;;  %v1478_v60 = vmul.f32 0.01, %v1462_v9  ;;  %v1481_v61 = vsel %vm1473_vm3, %v1459_v7, %v1477_v58 }
 0xcd4   :  { %v1484_v10 = vsel %vm1476_vm0, %v1470_v8, %v1480_v59 }
 0xcd5   :  { %v1482_v62 = vsel %vm1474_vm4, %v1462_v9, %v1478_v60  ;;  %v1487_v63 = vpack.c.bf16 %v1484_v10, %v1483_v4 }
 0xcd6   :  { %v1486_v51 = vpack.c.bf16 %v1482_v62, %v1481_v61 }
 0xcd7   :  { %v1501_v53 = vsel %vm269_vm1, %v1487_v63, 0 }
 0xcd8   :  { %v1498_v52 = vsel %vm269_vm1, %v1486_v51, 0 }
 0xcd9   :  { %1894 = vmatpush3.bf16.xpose.msra.mxu0 %v1498_v52 }
 0xcda   :  { %1895 = vmatprep.subr.bf16.mxu0 %v2128_v40 }
 0xce1   :  { %1896 = vmatpush3.bf16.xpose.msra.mxu0 %v1501_v53 }
 0xce8   :  { %1898 = vmatmul.mubr.msk.bf16.vlgmr.msra.gmra.mrb[36].mxu0 %vm269_vm1, %v1485_v54 }
 0xdbb   :  { %v1537_v5 = vpop.f32.mrb[36].mxu0 }
 0xdbc   :  { %v1538_v11 = vadd.f32 %v1537_v5, %v1492_v3  ;;  %v1899_v12 = vpop.f32.mrb[37].mxu0 }
 0xdbd   :  { %v1540_v13 = vpop.f32.mrb[38].mxu0 }
 0xdbe   :  { %v1900_v14 = vpop.f32.mrb[39].mxu0  ;;  %1544 = vst.msk [vmem:[#allocation13] sm:$0x1] %vm1543_vm5, %v1538_v11 }
 0xdbf   :  { %2097 = shalt.err (!%p2094_p10)
}
 0xdc0   :  { %s2098_s13 = scalar_lea.hbm %s2485_s11, 16 }
 0xdc1   :  { %p2099_p11 = scmp.ne.s32.totalorder %s2485_s11, %s2098_s13  ;;  %p2102_p12 = scmp.lt.u32.totalorder %s2098_s13, %s2485_s11 }
 0xdc3   :  { %p2104_p13 = pnand %p2102_p12, %p2099_p11 }
 0xdc5   :  { %2107 = shalt.err (!%p2104_p13)
}
 0xdc6   :  { %1554 = dma.vmem_to_hbm [thread:$0]  %s1552_s5, 16, %s2485_s11, [#allocation4]  }
 0xdc7   :  { %2116 = dma.done.wait [#allocation4], 16  }
 0xdc8   :  { %2117 = vsyncadd [#allocation4], 4294967280 }
 0xdc9   :  { %1558 = vsyncpa [#allocation3], 1 }
 0xdca   :  { %1559 = vsyncpa [#allocation6], 1 }
 0xdcb   :  { %1560 = vsyncpa [#allocation9], 1 }
 0xdcc   :  { %1561 = vsyncpa [#allocation12], 1 }
 0xdcd   :  { %1562 = vsyncpa [#allocation4], 1 }

</bundles_post_ra>
